<compile_context>
chip_gen: v7x
topology: tpu7x:2x2x1
jax: 0.10.0
libtpu: 0.0.40
codegen_flags: <defaults>
</compile_context>

<pallas_src>
import functools
import jax
import jax.numpy as jnp
from jax import lax
from jax.experimental import pallas as pl
from jax.experimental.pallas import tpu as pltpu


# ----------------------------------------------------------------------------
# Fused encoder + decoder kernel.
# ----------------------------------------------------------------------------
def _image_caption_kernel(patch_ref, wk_ref, cb_ref, pw_ref, pb_ref,
                          ids_ref, lens_ref, embed_ref, wx_ref, bx_ref,
                          wh_ref, wo_ref, bo_ref, out_ref, *, B, T, V, HW):
    # ---------------- Encoder ----------------
    # Conv3x3(pad=1) as a single im2col matmul: (B*HW, 9C) @ (9C, F), then bias + ReLU.
    conv = jnp.dot(patch_ref[...], wk_ref[...], preferred_element_type=jnp.float32)
    conv = jnp.maximum(conv + cb_ref[...], 0.0)                      # (B*HW, F)
    F = conv.shape[-1]
    # Global average pool: sublane reduction over each image's HW rows (XLU; no dense
    # selection-matrix matmul, no host-side Python double loop).
    pooled = jnp.mean(conv.reshape(B, HW, F), axis=1)                # (B, F)
    h0 = jnp.tanh(jnp.dot(pooled, pw_ref[...], preferred_element_type=jnp.float32)
                  + pb_ref[...])                                     # (B, D)

    # ---------------- Decoder ----------------
    TB = T * B
    # Fused embedding + input projection for ALL timesteps, hoisted off the serial chain:
    # one_hot(ids) @ (embed @ Wx).  Rows are time-major: r = t*B + b.
    # TODO(synk): at realistic vocab sizes replace the one-hot matmul with a gather of the
    #             fused (V,H) table (scalar-prefetched ids / jnp.take); fine at V=64.
    ids = ids_ref[...]                                               # (TB, 1) int32
    one_hot = (lax.broadcasted_iota(jnp.int32, (TB, V), 1) == ids).astype(jnp.float32)
    table = jnp.dot(embed_ref[...], wx_ref[...], preferred_element_type=jnp.float32)   # (V, H)
    xproj = jnp.dot(one_hot, table, preferred_element_type=jnp.float32) + bx_ref[...]  # (TB, H)

    # Serial tanh-RNN: only h @ Wh stays per step; history + validity mask live in
    # registers (no per-step sub-tile VMEM stores).
    lens = lens_ref[...]                                             # (B, 1) int32
    wh = wh_ref[...]
    h = h0
    hs, ms = [], []
    for t in range(T):                                               # T static, unrolled
        x_t = xproj[t * B:(t + 1) * B, :]
        h_new = jnp.tanh(x_t + jnp.dot(h, wh, preferred_element_type=jnp.float32))
        valid = lens > t                          # pack_padded: freeze h past real_lens
        h = jnp.where(valid, h_new, h)
        hs.append(h)
        ms.append(valid.astype(jnp.float32))
    hall = jnp.concatenate(hs, axis=0)                               # (TB, H) time-major
    mask = jnp.concatenate(ms, axis=0)                               # (TB, 1)

    # Deferred vocab projection over all TB rows at once; padded positions zeroed; output
    # written time-major and lane-dense (Vp multiple of 128). No permutation matmul.
    logits = jnp.dot(hall, wo_ref[...], preferred_element_type=jnp.float32) + bo_ref[...]
    out_ref[...] = (logits * mask).astype(out_ref.dtype)


# ----------------------------------------------------------------------------
# ImageCaption.forward
# ----------------------------------------------------------------------------
def image_caption_forward(img, caption, real_lens, params):
    B, C, H, W = img.shape
    F = params["conv_w"].shape[0]
    D = params["proj_w"].shape[1]
    Hdim = params["wh"].shape[0]
    V = params["embed"].shape[0]
    T = caption.shape[1]
    # TODO(synk): for realistic vocab sizes pad Vp to a multiple of 256 (v6e/v7x MXU width).
    Vp = ((V + 127) // 128) * 128

    # --- thin XLA glue (tiny relayouts only, no compute) ---
    # im2col patches: NCHW -> NHWC, zero-pad, 9 static shifted views over valid pixels only.
    x_nhwc = jnp.transpose(img, (0, 2, 3, 1))
    xp = jnp.pad(x_nhwc, ((0, 0), (1, 1), (1, 1), (0, 0)))           # (B, H+2, W+2, C)
    taps = [xp[:, dy:dy + H, dx:dx + W, :] for dy in range(3) for dx in range(3)]
    patches = jnp.concatenate(taps, axis=-1).reshape(B * H * W, 9 * C)   # (B*HW, 9C)

    # Per-tap conv weights: row (ky*3+kx)*C + c  ==  conv_w[f, c, ky, kx].
    wk = jnp.transpose(params["conv_w"], (2, 3, 1, 0)).reshape(9 * C, F)

    ids_tm = jnp.transpose(caption, (1, 0)).reshape(T * B, 1).astype(jnp.int32)  # time-major ids
    lens = real_lens.reshape(B, 1).astype(jnp.int32)
    wo_p = jnp.pad(params["wo"], ((0, 0), (0, Vp - V)))
    bo_p = jnp.pad(params["bo"].reshape(1, V), ((0, 0), (0, Vp - V)))

    kernel = functools.partial(_image_caption_kernel, B=B, T=T, V=V, HW=H * W)
    logits_tm = pl.pallas_call(
        kernel,
        out_shape=jax.ShapeDtypeStruct((T * B, Vp), jnp.float32),
        # No grid: the whole problem fits easily in VMEM at these shapes; explicit limit keeps
        # the budget honest for v7x's 64 MiB VMEM.
        # TODO(synk): for large T*B / V, tile the vocab projection over a grid axis marked
        #             "parallel" so v7x's second TensorCore is used.
        compiler_params=pltpu.CompilerParams(vmem_limit_bytes=32 * 1024 * 1024),
    )(patches, wk, params["conv_b"].reshape(1, F), params["proj_w"],
      params["proj_b"].reshape(1, D), ids_tm, lens, params["embed"], params["wx"],
      params["b"].reshape(1, Hdim), params["wh"], wo_p, bo_p)

    # Crop lane padding and relayout time-major -> (B, T, V): tiny XLA transpose, replaces the
    # old in-kernel (TB,TB) permutation matmul.
    return logits_tm[:, :V].reshape(T, B, V).transpose(1, 0, 2)


def init_params(key, *, C=4, F=8, D=32, Hdim=32, V=64):
    ks = jax.random.split(key, 8)
    s = 0.05
    return {
        "conv_w": s * jax.random.normal(ks[0], (F, C, 3, 3), jnp.float32),
        "conv_b": s * jax.random.normal(ks[1], (F,), jnp.float32),
        "proj_w": s * jax.random.normal(ks[2], (F, D), jnp.float32),
        "proj_b": s * jax.random.normal(ks[3], (D,), jnp.float32),
        "embed":  s * jax.random.normal(ks[4], (V, D), jnp.float32),
        "wx":     s * jax.random.normal(ks[5], (D, Hdim), jnp.float32),
        "wh":     s * jax.random.normal(ks[6], (Hdim, Hdim), jnp.float32),
        "b":      jnp.zeros((Hdim,), jnp.float32),
        "wo":     s * jax.random.normal(ks[7], (Hdim, V), jnp.float32),
        "bo":     jnp.zeros((V,), jnp.float32),
    }


if __name__ == "__main__":
    B, C, H, W = 2, 4, 16, 16
    T, V = 8, 64

    key = jax.random.PRNGKey(0)
    k_img, k_cap, k_param = jax.random.split(key, 3)

    img = jax.random.normal(k_img, (B, C, H, W), jnp.float32)          # NCHW, like PyTorch
    caption = jax.random.randint(k_cap, (B, T), 0, V, dtype=jnp.int32)
    real_lens = jnp.array([T, T - 3], dtype=jnp.int32)

    params = init_params(k_param)

    predictions = image_caption_forward(img, caption, real_lens, params)
    jax.block_until_ready(predictions)

    assert predictions.shape == (B, T, V)
    # TODO(synk): pack_padded_sequence is emulated in-kernel (hidden frozen + padded logits
    #             zeroed), matching pad_packed_sequence's zero-padded output.
    print("KERNEL_OK")
</pallas_src>

<mosaic_0001>
module attributes {stable_mosaic.version = 11 : i64} {
  func.func @_image_caption_kernel(%arg0: memref<512x36xf32, #tpu.memory_space<vmem>>, %arg1: memref<36x8xf32, #tpu.memory_space<vmem>>, %arg2: memref<1x8xf32, #tpu.memory_space<vmem>>, %arg3: memref<8x32xf32, #tpu.memory_space<vmem>>, %arg4: memref<1x32xf32, #tpu.memory_space<vmem>>, %arg5: memref<16x1xi32, #tpu.memory_space<vmem>>, %arg6: memref<2x1xi32, #tpu.memory_space<vmem>>, %arg7: memref<64x32xf32, #tpu.memory_space<vmem>>, %arg8: memref<32x32xf32, #tpu.memory_space<vmem>>, %arg9: memref<1x32xf32, #tpu.memory_space<vmem>>, %arg10: memref<32x32xf32, #tpu.memory_space<vmem>>, %arg11: memref<32x128xf32, #tpu.memory_space<vmem>>, %arg12: memref<1x128xf32, #tpu.memory_space<vmem>>, %arg13: memref<16x128xf32, #tpu.memory_space<vmem>>) attributes {dimension_semantics = [], scalar_prefetch = 0 : i64, scratch_operands = 0 : i64, tpu.core_type = #tpu.core_type<tc>} {
    %c0 = arith.constant 0 : index
    %c0_0 = arith.constant 0 : index
    %0 = vector.load %arg0[%c0, %c0_0] : memref<512x36xf32, #tpu.memory_space<vmem>>, vector<512x36xf32>
    %c0_1 = arith.constant 0 : index
    %c0_2 = arith.constant 0 : index
    %1 = vector.load %arg1[%c0_1, %c0_2] : memref<36x8xf32, #tpu.memory_space<vmem>>, vector<36x8xf32>
    %cst = arith.constant dense<0.000000e+00> : vector<512x8xf32>
    %2 = tpu.matmul %0, %1, %cst {dimension_numbers = #tpu.dot_dimension_numbers<[1], [0], [0], [1], [0, 0, 1, 1], [], []>} : vector<512x36xf32>, vector<36x8xf32>, vector<512x8xf32> -> vector<512x8xf32>
    %c0_3 = arith.constant 0 : index
    %c0_4 = arith.constant 0 : index
    %3 = vector.load %arg2[%c0_3, %c0_4] : memref<1x8xf32, #tpu.memory_space<vmem>>, vector<1x8xf32>
    %4 = vector.broadcast %3 : vector<1x8xf32> to vector<512x8xf32>
    %5 = arith.addf %2, %4 : vector<512x8xf32>
    %cst_5 = arith.constant 0.000000e+00 : f32
    %6 = vector.broadcast %cst_5 : f32 to vector<512x8xf32>
    %7 = arith.maximumf %5, %6 : vector<512x8xf32>
    %8 = vector.shape_cast %7 : vector<512x8xf32> to vector<2x256x8xf32>
    %cst_6 = arith.constant dense<0.000000e+00> : vector<2x8xf32>
    %9 = vector.multi_reduction <add>, %8, %cst_6 [1] : vector<2x256x8xf32> to vector<2x8xf32>
    %cst_7 = arith.constant 2.560000e+02 : f32
    %10 = vector.broadcast %cst_7 : f32 to vector<2x8xf32>
    %11 = arith.divf %9, %10 : vector<2x8xf32>
    %c0_8 = arith.constant 0 : index
    %c0_9 = arith.constant 0 : index
    %12 = vector.load %arg3[%c0_8, %c0_9] : memref<8x32xf32, #tpu.memory_space<vmem>>, vector<8x32xf32>
    %cst_10 = arith.constant dense<0.000000e+00> : vector<2x32xf32>
    %13 = tpu.matmul %11, %12, %cst_10 {dimension_numbers = #tpu.dot_dimension_numbers<[1], [0], [0], [1], [0, 0, 1, 1], [], []>} : vector<2x8xf32>, vector<8x32xf32>, vector<2x32xf32> -> vector<2x32xf32>
    %c0_11 = arith.constant 0 : index
    %c0_12 = arith.constant 0 : index
    %14 = vector.load %arg4[%c0_11, %c0_12] : memref<1x32xf32, #tpu.memory_space<vmem>>, vector<1x32xf32>
    %15 = vector.broadcast %14 : vector<1x32xf32> to vector<2x32xf32>
    %16 = arith.addf %13, %15 : vector<2x32xf32>
    %17 = math.tanh %16 : vector<2x32xf32>
    %c0_13 = arith.constant 0 : index
    %c0_14 = arith.constant 0 : index
    %18 = vector.load %arg5[%c0_13, %c0_14] : memref<16x1xi32, #tpu.memory_space<vmem>>, vector<16x1xi32>
    %19 = tpu.iota {dimensions = array<i32: 1>} : vector<16x64xi32>
    %20 = vector.broadcast %18 : vector<16x1xi32> to vector<16x64xi32>
    %21 = arith.cmpi eq, %19, %20 : vector<16x64xi32>
    %22 = arith.extui %21 : vector<16x64xi1> to vector<16x64xi32>
    %23 = arith.sitofp %22 : vector<16x64xi32> to vector<16x64xf32>
    %c0_15 = arith.constant 0 : index
    %c0_16 = arith.constant 0 : index
    %24 = vector.load %arg7[%c0_15, %c0_16] : memref<64x32xf32, #tpu.memory_space<vmem>>, vector<64x32xf32>
    %c0_17 = arith.constant 0 : index
    %c0_18 = arith.constant 0 : index
    %25 = vector.load %arg8[%c0_17, %c0_18] : memref<32x32xf32, #tpu.memory_space<vmem>>, vector<32x32xf32>
    %cst_19 = arith.constant dense<0.000000e+00> : vector<64x32xf32>
    %26 = tpu.matmul %24, %25, %cst_19 {dimension_numbers = #tpu.dot_dimension_numbers<[1], [0], [0], [1], [0, 0, 1, 1], [], []>} : vector<64x32xf32>, vector<32x32xf32>, vector<64x32xf32> -> vector<64x32xf32>
    %cst_20 = arith.constant dense<0.000000e+00> : vector<16x32xf32>
    %27 = tpu.matmul %23, %26, %cst_20 {dimension_numbers = #tpu.dot_dimension_numbers<[1], [0], [0], [1], [0, 0, 1, 1], [], []>} : vector<16x64xf32>, vector<64x32xf32>, vector<16x32xf32> -> vector<16x32xf32>
    %c0_21 = arith.constant 0 : index
    %c0_22 = arith.constant 0 : index
    %28 = vector.load %arg9[%c0_21, %c0_22] : memref<1x32xf32, #tpu.memory_space<vmem>>, vector<1x32xf32>
    %29 = vector.broadcast %28 : vector<1x32xf32> to vector<16x32xf32>
    %30 = arith.addf %27, %29 : vector<16x32xf32>
    %c0_23 = arith.constant 0 : index
    %c0_24 = arith.constant 0 : index
    %31 = vector.load %arg6[%c0_23, %c0_24] : memref<2x1xi32, #tpu.memory_space<vmem>>, vector<2x1xi32>
    %c0_25 = arith.constant 0 : index
    %c0_26 = arith.constant 0 : index
    %32 = vector.load %arg10[%c0_25, %c0_26] : memref<32x32xf32, #tpu.memory_space<vmem>>, vector<32x32xf32>
    %33 = vector.extract_strided_slice %30 {offsets = [0, 0], sizes = [2, 32], strides = [1, 1]} : vector<16x32xf32> to vector<2x32xf32>
    %cst_27 = arith.constant dense<0.000000e+00> : vector<2x32xf32>
    %34 = tpu.matmul %17, %32, %cst_27 {dimension_numbers = #tpu.dot_dimension_numbers<[1], [0], [0], [1], [0, 0, 1, 1], [], []>} : vector<2x32xf32>, vector<32x32xf32>, vector<2x32xf32> -> vector<2x32xf32>
    %35 = arith.addf %33, %34 : vector<2x32xf32>
    %36 = math.tanh %35 : vector<2x32xf32>
    %c0_i32 = arith.constant 0 : i32
    %37 = vector.broadcast %c0_i32 : i32 to vector<2x1xi32>
    %38 = arith.cmpi sgt, %31, %37 : vector<2x1xi32>
    %39 = vector.shape_cast %38 : vector<2x1xi1> to vector<2x1xi1>
    %40 = vector.broadcast %39 : vector<2x1xi1> to vector<2x32xi1>
    %41 = arith.select %40, %36, %17 : vector<2x32xi1>, vector<2x32xf32>
    %42 = arith.extui %38 : vector<2x1xi1> to vector<2x1xi32>
    %43 = arith.sitofp %42 : vector<2x1xi32> to vector<2x1xf32>
    %44 = vector.extract_strided_slice %30 {offsets = [2, 0], sizes = [2, 32], strides = [1, 1]} : vector<16x32xf32> to vector<2x32xf32>
    %cst_28 = arith.constant dense<0.000000e+00> : vector<2x32xf32>
    %45 = tpu.matmul %41, %32, %cst_28 {dimension_numbers = #tpu.dot_dimension_numbers<[1], [0], [0], [1], [0, 0, 1, 1], [], []>} : vector<2x32xf32>, vector<32x32xf32>, vector<2x32xf32> -> vector<2x32xf32>
    %46 = arith.addf %44, %45 : vector<2x32xf32>
    %47 = math.tanh %46 : vector<2x32xf32>
    %c1_i32 = arith.constant 1 : i32
    %48 = vector.broadcast %c1_i32 : i32 to vector<2x1xi32>
    %49 = arith.cmpi sgt, %31, %48 : vector<2x1xi32>
    %50 = vector.shape_cast %49 : vector<2x1xi1> to vector<2x1xi1>
    %51 = vector.broadcast %50 : vector<2x1xi1> to vector<2x32xi1>
    %52 = arith.select %51, %47, %41 : vector<2x32xi1>, vector<2x32xf32>
    %53 = arith.extui %49 : vector<2x1xi1> to vector<2x1xi32>
    %54 = arith.sitofp %53 : vector<2x1xi32> to vector<2x1xf32>
    %55 = vector.extract_strided_slice %30 {offsets = [4, 0], sizes = [2, 32], strides = [1, 1]} : vector<16x32xf32> to vector<2x32xf32>
    %cst_29 = arith.constant dense<0.000000e+00> : vector<2x32xf32>
    %56 = tpu.matmul %52, %32, %cst_29 {dimension_numbers = #tpu.dot_dimension_numbers<[1], [0], [0], [1], [0, 0, 1, 1], [], []>} : vector<2x32xf32>, vector<32x32xf32>, vector<2x32xf32> -> vector<2x32xf32>
    %57 = arith.addf %55, %56 : vector<2x32xf32>
    %58 = math.tanh %57 : vector<2x32xf32>
    %c2_i32 = arith.constant 2 : i32
    %59 = vector.broadcast %c2_i32 : i32 to vector<2x1xi32>
    %60 = arith.cmpi sgt, %31, %59 : vector<2x1xi32>
    %61 = vector.shape_cast %60 : vector<2x1xi1> to vector<2x1xi1>
    %62 = vector.broadcast %61 : vector<2x1xi1> to vector<2x32xi1>
    %63 = arith.select %62, %58, %52 : vector<2x32xi1>, vector<2x32xf32>
    %64 = arith.extui %60 : vector<2x1xi1> to vector<2x1xi32>
    %65 = arith.sitofp %64 : vector<2x1xi32> to vector<2x1xf32>
    %66 = vector.extract_strided_slice %30 {offsets = [6, 0], sizes = [2, 32], strides = [1, 1]} : vector<16x32xf32> to vector<2x32xf32>
    %cst_30 = arith.constant dense<0.000000e+00> : vector<2x32xf32>
    %67 = tpu.matmul %63, %32, %cst_30 {dimension_numbers = #tpu.dot_dimension_numbers<[1], [0], [0], [1], [0, 0, 1, 1], [], []>} : vector<2x32xf32>, vector<32x32xf32>, vector<2x32xf32> -> vector<2x32xf32>
    %68 = arith.addf %66, %67 : vector<2x32xf32>
    %69 = math.tanh %68 : vector<2x32xf32>
    %c3_i32 = arith.constant 3 : i32
    %70 = vector.broadcast %c3_i32 : i32 to vector<2x1xi32>
    %71 = arith.cmpi sgt, %31, %70 : vector<2x1xi32>
    %72 = vector.shape_cast %71 : vector<2x1xi1> to vector<2x1xi1>
    %73 = vector.broadcast %72 : vector<2x1xi1> to vector<2x32xi1>
    %74 = arith.select %73, %69, %63 : vector<2x32xi1>, vector<2x32xf32>
    %75 = arith.extui %71 : vector<2x1xi1> to vector<2x1xi32>
    %76 = arith.sitofp %75 : vector<2x1xi32> to vector<2x1xf32>
    %77 = vector.extract_strided_slice %30 {offsets = [8, 0], sizes = [2, 32], strides = [1, 1]} : vector<16x32xf32> to vector<2x32xf32>
    %cst_31 = arith.constant dense<0.000000e+00> : vector<2x32xf32>
    %78 = tpu.matmul %74, %32, %cst_31 {dimension_numbers = #tpu.dot_dimension_numbers<[1], [0], [0], [1], [0, 0, 1, 1], [], []>} : vector<2x32xf32>, vector<32x32xf32>, vector<2x32xf32> -> vector<2x32xf32>
    %79 = arith.addf %77, %78 : vector<2x32xf32>
    %80 = math.tanh %79 : vector<2x32xf32>
    %c4_i32 = arith.constant 4 : i32
    %81 = vector.broadcast %c4_i32 : i32 to vector<2x1xi32>
    %82 = arith.cmpi sgt, %31, %81 : vector<2x1xi32>
    %83 = vector.shape_cast %82 : vector<2x1xi1> to vector<2x1xi1>
    %84 = vector.broadcast %83 : vector<2x1xi1> to vector<2x32xi1>
    %85 = arith.select %84, %80, %74 : vector<2x32xi1>, vector<2x32xf32>
    %86 = arith.extui %82 : vector<2x1xi1> to vector<2x1xi32>
    %87 = arith.sitofp %86 : vector<2x1xi32> to vector<2x1xf32>
    %88 = vector.extract_strided_slice %30 {offsets = [10, 0], sizes = [2, 32], strides = [1, 1]} : vector<16x32xf32> to vector<2x32xf32>
    %cst_32 = arith.constant dense<0.000000e+00> : vector<2x32xf32>
    %89 = tpu.matmul %85, %32, %cst_32 {dimension_numbers = #tpu.dot_dimension_numbers<[1], [0], [0], [1], [0, 0, 1, 1], [], []>} : vector<2x32xf32>, vector<32x32xf32>, vector<2x32xf32> -> vector<2x32xf32>
    %90 = arith.addf %88, %89 : vector<2x32xf32>
    %91 = math.tanh %90 : vector<2x32xf32>
    %c5_i32 = arith.constant 5 : i32
    %92 = vector.broadcast %c5_i32 : i32 to vector<2x1xi32>
    %93 = arith.cmpi sgt, %31, %92 : vector<2x1xi32>
    %94 = vector.shape_cast %93 : vector<2x1xi1> to vector<2x1xi1>
    %95 = vector.broadcast %94 : vector<2x1xi1> to vector<2x32xi1>
    %96 = arith.select %95, %91, %85 : vector<2x32xi1>, vector<2x32xf32>
    %97 = arith.extui %93 : vector<2x1xi1> to vector<2x1xi32>
    %98 = arith.sitofp %97 : vector<2x1xi32> to vector<2x1xf32>
    %99 = vector.extract_strided_slice %30 {offsets = [12, 0], sizes = [2, 32], strides = [1, 1]} : vector<16x32xf32> to vector<2x32xf32>
    %cst_33 = arith.constant dense<0.000000e+00> : vector<2x32xf32>
    %100 = tpu.matmul %96, %32, %cst_33 {dimension_numbers = #tpu.dot_dimension_numbers<[1], [0], [0], [1], [0, 0, 1, 1], [], []>} : vector<2x32xf32>, vector<32x32xf32>, vector<2x32xf32> -> vector<2x32xf32>
    %101 = arith.addf %99, %100 : vector<2x32xf32>
    %102 = math.tanh %101 : vector<2x32xf32>
    %c6_i32 = arith.constant 6 : i32
    %103 = vector.broadcast %c6_i32 : i32 to vector<2x1xi32>
    %104 = arith.cmpi sgt, %31, %103 : vector<2x1xi32>
    %105 = vector.shape_cast %104 : vector<2x1xi1> to vector<2x1xi1>
    %106 = vector.broadcast %105 : vector<2x1xi1> to vector<2x32xi1>
    %107 = arith.select %106, %102, %96 : vector<2x32xi1>, vector<2x32xf32>
    %108 = arith.extui %104 : vector<2x1xi1> to vector<2x1xi32>
    %109 = arith.sitofp %108 : vector<2x1xi32> to vector<2x1xf32>
    %110 = vector.extract_strided_slice %30 {offsets = [14, 0], sizes = [2, 32], strides = [1, 1]} : vector<16x32xf32> to vector<2x32xf32>
    %cst_34 = arith.constant dense<0.000000e+00> : vector<2x32xf32>
    %111 = tpu.matmul %107, %32, %cst_34 {dimension_numbers = #tpu.dot_dimension_numbers<[1], [0], [0], [1], [0, 0, 1, 1], [], []>} : vector<2x32xf32>, vector<32x32xf32>, vector<2x32xf32> -> vector<2x32xf32>
    %112 = arith.addf %110, %111 : vector<2x32xf32>
    %113 = math.tanh %112 : vector<2x32xf32>
    %c7_i32 = arith.constant 7 : i32
    %114 = vector.broadcast %c7_i32 : i32 to vector<2x1xi32>
    %115 = arith.cmpi sgt, %31, %114 : vector<2x1xi32>
    %116 = vector.shape_cast %115 : vector<2x1xi1> to vector<2x1xi1>
    %117 = vector.broadcast %116 : vector<2x1xi1> to vector<2x32xi1>
    %118 = arith.select %117, %113, %107 : vector<2x32xi1>, vector<2x32xf32>
    %119 = arith.extui %115 : vector<2x1xi1> to vector<2x1xi32>
    %120 = arith.sitofp %119 : vector<2x1xi32> to vector<2x1xf32>
    %121 = tpu.concatenate %41, %52, %63, %74, %85, %96, %107, %118 in 0 : vector<2x32xf32>, vector<2x32xf32>, vector<2x32xf32>, vector<2x32xf32>, vector<2x32xf32>, vector<2x32xf32>, vector<2x32xf32>, vector<2x32xf32> -> vector<16x32xf32>
    %122 = tpu.concatenate %43, %54, %65, %76, %87, %98, %109, %120 in 0 : vector<2x1xf32>, vector<2x1xf32>, vector<2x1xf32>, vector<2x1xf32>, vector<2x1xf32>, vector<2x1xf32>, vector<2x1xf32>, vector<2x1xf32> -> vector<16x1xf32>
    %c0_35 = arith.constant 0 : index
    %c0_36 = arith.constant 0 : index
    %123 = vector.load %arg11[%c0_35, %c0_36] : memref<32x128xf32, #tpu.memory_space<vmem>>, vector<32x128xf32>
    %cst_37 = arith.constant dense<0.000000e+00> : vector<16x128xf32>
    %124 = tpu.matmul %121, %123, %cst_37 {dimension_numbers = #tpu.dot_dimension_numbers<[1], [0], [0], [1], [0, 0, 1, 1], [], []>} : vector<16x32xf32>, vector<32x128xf32>, vector<16x128xf32> -> vector<16x128xf32>
    %c0_38 = arith.constant 0 : index
    %c0_39 = arith.constant 0 : index
    %125 = vector.load %arg12[%c0_38, %c0_39] : memref<1x128xf32, #tpu.memory_space<vmem>>, vector<1x128xf32>
    %126 = vector.broadcast %125 : vector<1x128xf32> to vector<16x128xf32>
    %127 = arith.addf %124, %126 : vector<16x128xf32>
    %128 = vector.broadcast %122 : vector<16x1xf32> to vector<16x128xf32>
    %129 = arith.mulf %127, %128 : vector<16x128xf32>
    %c0_40 = arith.constant 0 : index
    %c0_41 = arith.constant 0 : index
    %130 = vector.load %arg13[%c0_40, %c0_41] : memref<16x128xf32, #tpu.memory_space<vmem>>, vector<16x128xf32>
    tpu.vector_store %arg13[%c0_40, %c0_41], %129 {strides = array<i32>} : memref<16x128xf32, #tpu.memory_space<vmem>>, vector<16x128xf32>,
    return
  }
}

</mosaic_0001>

<bundles_post_ra>
// kernel: tpu_custom_call.1
= control target key start
LH: loop header
LB: loop body
LE: loop exit
PB: predicated region body
PF: predicated region fallthrough
CT: control target
= control target key end

     0   :  { %vm121_vm0 = vcmask 293888   ;;  %vm314_vm1 = vcmask 1043456   ;;  %s3530_s0 = inlined_call_operand.vmem [shape: f32[512,36], index: 0, kind: input, shape index: {}]   ;;  %s3531_s1 = inlined_call_operand.vmem [shape: f32[36,8], index: 1, kind: input, shape index: {}]   ;;  %s3532_s2 = inlined_call_operand.vmem [shape: f32[1,8], index: 2, kind: input, shape index: {}]   ;;  %s3533_s3 = inlined_call_operand.vmem [shape: f32[8,32], index: 3, kind: input, shape index: {}]   ;;  %s3534_s4 = inlined_call_operand.vmem [shape: f32[1,32], index: 4, kind: input, shape index: {}]   ;;  %s3535_s5 = inlined_call_operand.vmem [shape: s32[16,1], index: 5, kind: input, shape index: {}]   ;;  %s3536_s6 = inlined_call_operand.vmem [shape: s32[2,1], index: 6, kind: input, shape index: {}]   ;;  %s3537_s7 = inlined_call_operand.vmem [shape: f32[64,32], index: 7, kind: input, shape index: {}]   ;;  %s3538_s8 = inlined_call_operand.vmem [shape: f32[32,32], index: 8, kind: input, shape index: {}]   ;;  %s3539_s9 = inlined_call_operand.vmem [shape: f32[1,32], index: 9, kind: input, shape index: {}]   ;;  %s3540_s10 = inlined_call_operand.vmem [shape: f32[32,32], index: 10, kind: input, shape index: {}]   ;;  %s3541_s11 = inlined_call_operand.vmem [shape: f32[32,128], index: 11, kind: input, shape index: {}]   ;;  %s3542_s12 = inlined_call_operand.vmem [shape: f32[1,128], index: 12, kind: input, shape index: {}]   ;;  %s3543_s13 = inlined_call_operand.hbm [shape: f32[16,128], index: 13, kind: output, shape index: {}]  }
   0x1   :  { %v109_v0 = vld [vmem:[%s3531_s1] sm:$0xff]  ;;  %v110_v1 = vld [vmem:[%s3531_s1 + $0x8] sm:$0xff]  ;;  %v111_v2 = vld [vmem:[%s3531_s1 + $0x10] sm:$0xff] }
   0x2   :  { %v2601_v3 = vpack.c.bf16 %v110_v1, %v109_v0  ;;  %v112_v4 = vld [vmem:[%s3531_s1 + $0x18] sm:$0xff]  ;;  %v45_v5 = vld [vmem:[%s3530_s0] sm:$0xff]  ;;  %v46_v8 = vld [vmem:[%s3530_s0 + $0x8] sm:$0xff] }
   0x3   :  { %v2605_v6 = vpack.c.bf16 %v112_v4, %v111_v2  ;;  %2362 = vmatprep.mubr.msk.f32.mxu0 %vm121_vm0, %v45_v5  ;;  %v113_v7 = vld [vmem:[%s3531_s1 + $0x20] sm:$0xf]  ;;  %v47_v9 = vld [vmem:[%s3530_s0 + $0x10] sm:$0xff]  ;;  %v48_v10 = vld [vmem:[%s3530_s0 + $0x18] sm:$0xff] }
   0x4   :  { %2602 = vmatprep.subr.bf16.mxu0 %v2601_v3  ;;  %2689 = vmatprep.subr.bf16.mxu1 %v2601_v3  ;;  %v49_v11 = vld [vmem:[%s3530_s0 + $0x20] sm:$0xff]  ;;  %v50_v12 = vld [vmem:[%s3530_s0 + $0x28] sm:$0xff]  ;;  %v51_v13 = vld [vmem:[%s3530_s0 + $0x30] sm:$0xff] }
   0x5   :  { %2604 = vmatpush3.bf16.msra.mxu0 %v2601_v3  ;;  %2692 = vmatpush3.bf16.msra.mxu1 %v2601_v3  ;;  %v103_v14 = vld [vmem:[%s3530_s0 + $0x1d0] sm:$0xff]  ;;  %v104_v15 = vld [vmem:[%s3530_s0 + $0x1d8] sm:$0xff]  ;;  %v105_v16 = vld [vmem:[%s3530_s0 + $0x1e0] sm:$0xff] }
   0x6   :  { %2606 = vmatprep.subr.bf16.mxu0 %v2605_v6  ;;  %2690 = vmatprep.subr.bf16.mxu1 %v2605_v6  ;;  %v52_v17 = vld [vmem:[%s3530_s0 + $0x38] sm:$0xff]  ;;  %v53_v18 = vld [vmem:[%s3530_s0 + $0x40] sm:$0xff] }
   0x7   :  { %2449 = vmatprep.mubr.msk.f32.mxu1 %vm121_vm0, %v103_v14 }
   0x9   :  { %2608 = vmatpush3.bf16.msra.mxu0 %v2605_v6  ;;  %2693 = vmatpush3.bf16.msra.mxu1 %v2605_v6 }
   0xa   :  { %2360 = vmatprep.subr.msk.mxu0 %vm314_vm1, %v113_v7  ;;  %2691 = vmatprep.subr.msk.mxu1 %vm314_vm1, %v113_v7 }
   0xd   :  { %2361 = vmatpush3.msk.msra.mxu0 %vm314_vm1, %v113_v7  ;;  %2694 = vmatpush3.msk.msra.mxu1 %vm314_vm1, %v113_v7 }
   0xe   :  { %2363 = vmatmul.mubr.msk.f32.vlgmr.msra.gmra.mrb[0].mxu0 %vm121_vm0, %v46_v8  ;;  %2450 = vmatmul.mubr.msk.f32.vlgmr.msra.gmra.mrb[0].mxu1 %vm121_vm0, %v104_v15 }
   0xf   :  { %2365 = vmatprep.mubr.msk.f32.mxu0 %vm121_vm0, %v47_v9 }
  0x12   :  { %2366 = vmatmul.mubr.msk.f32.gmra.mrb[2].mxu0 %vm121_vm0, %v48_v10 }
  0x13   :  { %2368 = vmatprep.mubr.msk.f32.mxu0 %vm121_vm0, %v49_v11 }
  0x16   :  { %2369 = vmatmul.mubr.msk.f32.gmra.mrb[4].mxu0 %vm121_vm0, %v50_v12 }
  0x17   :  { %2371 = vmatprep.mubr.msk.f32.mxu0 %vm121_vm0, %v51_v13 }
  0x18   :  { %18 = vsyncpa [#allocation3], 0  ;;  %2452 = vmatprep.mubr.msk.f32.mxu1 %vm121_vm0, %v105_v16  ;;  %v106_v19 = vld [vmem:[%s3530_s0 + $0x1e8] sm:$0xff]  ;;  %v107_v20 = vld [vmem:[%s3530_s0 + $0x1f0] sm:$0xff]  ;;  %vm767_vm2 = vcmask 64512   ;;  %vm2752_vm3 = vmmov 0  }
  0x19   :  { %v54_v21 = vld [vmem:[%s3530_s0 + $0x48] sm:$0xff]  ;;  %v55_v22 = vld [vmem:[%s3530_s0 + $0x50] sm:$0xff]  ;;  %2453 = vmatmul.mubr.msk.f32.gmra.mrb[2].mxu1 %vm121_vm0, %v106_v19  ;;  %v108_v23 = vld [vmem:[%s3530_s0 + $0x1f8] sm:$0xff]  ;;  %vm1959_vm7 = vcmask 1041408   ;;  %vm1962_vm13 = vcmask 1045504   ;;  %vm919_vm14 = vcmask 1041409  }
  0x1a   :  { %2372 = vmatmul.mubr.msk.f32.gmra.mrb[6].mxu0 %vm121_vm0, %v52_v17  ;;  %2455 = vmatprep.mubr.msk.f32.mxu1 %vm121_vm0, %v107_v20  ;;  %v56_v24 = vld [vmem:[%s3530_s0 + $0x58] sm:$0xff]  ;;  %v57_v25 = vld [vmem:[%s3530_s0 + $0x60] sm:$0xff]  ;;  %v58_v26 = vld [vmem:[%s3530_s0 + $0x68] sm:$0xff]  ;;  %vm1022_vm15 = vcmask 261120  }
  0x1b   :  { %2374 = vmatprep.mubr.msk.f32.mxu0 %vm121_vm0, %v53_v18  ;;  %v59_v27 = vld [vmem:[%s3530_s0 + $0x70] sm:$0xff]  ;;  %v60_v28 = vld [vmem:[%s3530_s0 + $0x78] sm:$0xff]  ;;  %v61_v29 = vld [vmem:[%s3530_s0 + $0x80] sm:$0xff] }
  0x1c   :  { %v62_v30 = vld [vmem:[%s3530_s0 + $0x88] sm:$0xff]  ;;  %v63_v31 = vld [vmem:[%s3530_s0 + $0x90] sm:$0xff]  ;;  %v64_v32 = vld [vmem:[%s3530_s0 + $0x98] sm:$0xff] }
  0x1d   :  { %2456 = vmatmul.mubr.msk.f32.gmra.mrb[4].mxu1 %vm121_vm0, %v108_v23  ;;  %v65_v33 = vld [vmem:[%s3530_s0 + $0xa0] sm:$0xff]  ;;  %v66_v34 = vld [vmem:[%s3530_s0 + $0xa8] sm:$0xff]  ;;  %v67_v35 = vld [vmem:[%s3530_s0 + $0xb0] sm:$0xff] }
  0x1e   :  { %2375 = vmatmul.mubr.msk.f32.gmra.mrb[8].mxu0 %vm121_vm0, %v54_v21  ;;  %v68_v36 = vld [vmem:[%s3530_s0 + $0xb8] sm:$0xff]  ;;  %v69_v37 = vld [vmem:[%s3530_s0 + $0xc0] sm:$0xff]  ;;  %v70_v38 = vld [vmem:[%s3530_s0 + $0xc8] sm:$0xff] }
  0x1f   :  { %2377 = vmatprep.mubr.msk.f32.mxu0 %vm121_vm0, %v55_v22  ;;  %v71_v39 = vld [vmem:[%s3530_s0 + $0xd0] sm:$0xff]  ;;  %v72_v40 = vld [vmem:[%s3530_s0 + $0xd8] sm:$0xff]  ;;  %v73_v41 = vld [vmem:[%s3530_s0 + $0xe0] sm:$0xff] }
  0x20   :  { %v74_v42 = vld [vmem:[%s3530_s0 + $0xe8] sm:$0xff]  ;;  %v75_v43 = vld [vmem:[%s3530_s0 + $0xf0] sm:$0xff]  ;;  %v76_v44 = vld [vmem:[%s3530_s0 + $0xf8] sm:$0xff] }
  0x21   :  { %v77_v45 = vld [vmem:[%s3530_s0 + $0x100] sm:$0xff]  ;;  %v78_v46 = vld [vmem:[%s3530_s0 + $0x108] sm:$0xff]  ;;  %v79_v47 = vld [vmem:[%s3530_s0 + $0x110] sm:$0xff] }
  0x22   :  { %2378 = vmatmul.mubr.msk.f32.gmra.mrb[10].mxu0 %vm121_vm0, %v56_v24  ;;  %v80_v48 = vld [vmem:[%s3530_s0 + $0x118] sm:$0xff]  ;;  %v81_v49 = vld [vmem:[%s3530_s0 + $0x120] sm:$0xff]  ;;  %v82_v50 = vld [vmem:[%s3530_s0 + $0x128] sm:$0xff] }
  0x23   :  { %2380 = vmatprep.mubr.msk.f32.mxu0 %vm121_vm0, %v57_v25  ;;  %v83_v51 = vld [vmem:[%s3530_s0 + $0x130] sm:$0xff]  ;;  %v84_v52 = vld [vmem:[%s3530_s0 + $0x138] sm:$0xff]  ;;  %v85_v53 = vld [vmem:[%s3530_s0 + $0x140] sm:$0xff] }
  0x24   :  { %v86_v54 = vld [vmem:[%s3530_s0 + $0x148] sm:$0xff]  ;;  %v87_v55 = vld [vmem:[%s3530_s0 + $0x150] sm:$0xff]  ;;  %v88_v56 = vld [vmem:[%s3530_s0 + $0x158] sm:$0xff] }
  0x25   :  { %v89_v57 = vld [vmem:[%s3530_s0 + $0x160] sm:$0xff]  ;;  %v90_v58 = vld [vmem:[%s3530_s0 + $0x168] sm:$0xff]  ;;  %v91_v59 = vld [vmem:[%s3530_s0 + $0x170] sm:$0xff] }
  0x26   :  { %2381 = vmatmul.mubr.msk.f32.gmra.mrb[12].mxu0 %vm121_vm0, %v58_v26  ;;  %v92_v60 = vld [vmem:[%s3530_s0 + $0x178] sm:$0xff]  ;;  %v93_v61 = vld [vmem:[%s3530_s0 + $0x180] sm:$0xff]  ;;  %v94_v62 = vld [vmem:[%s3530_s0 + $0x188] sm:$0xff] }
  0x27   :  { %2383 = vmatprep.mubr.msk.f32.mxu0 %vm121_vm0, %v59_v27  ;;  %v95_v63 = vld [vmem:[%s3530_s0 + $0x190] sm:$0xff]  ;;  %v96_v0 = vld [vmem:[%s3530_s0 + $0x198] sm:$0xff]  ;;  %v97_v1 = vld [vmem:[%s3530_s0 + $0x1a0] sm:$0xff] }
  0x28   :  { %v98_v2 = vld [vmem:[%s3530_s0 + $0x1a8] sm:$0xff]  ;;  %v99_v3 = vld [vmem:[%s3530_s0 + $0x1b0] sm:$0xff]  ;;  %v100_v4 = vld [vmem:[%s3530_s0 + $0x1b8] sm:$0xff] }
  0x29   :  { %v101_v5 = vld [vmem:[%s3530_s0 + $0x1c0] sm:$0xff]  ;;  %v102_v6 = vld [vmem:[%s3530_s0 + $0x1c8] sm:$0xff] }
  0x2a   :  { %2384 = vmatmul.mubr.msk.f32.gmra.mrb[14].mxu0 %vm121_vm0, %v60_v28  ;;  %v3106_v7 = vld [vmem:[%s3532_s2] ss:$0 sm:$0xff]  ;;  %s2755_s2 = smov [#allocation2]  }
  0x2b   :  { %2386 = vmatprep.mubr.msk.f32.mxu0 %vm121_vm0, %v61_v29  ;;  %s2102_s22 = sshll.u32 %s2755_s2, 4  ;;  %s2103_s22 = int_to_ptr.vmem [resolvable:$true] %s2102_s22 }
  0x2c   :  { %s2727_s23 = scalar_lea.vmem %s2103_s22, 256  ;;  %p2732_p1 = scmp.lt.s32.totalorder %s2103_s22, %s2103_s22 }
  0x2d   :  { %p2728_p0 = scmp.ne.s32.totalorder %s2103_s22, %s2727_s23  ;;  %p2733_p2 = scmp.lt.s32.totalorder %s2727_s23, %s2727_s23 }
  0x2e   :  { %2387 = vmatmul.mubr.msk.f32.gmra.mrb[16].mxu0 %vm121_vm0, %v62_v30 }
  0x2f   :  { %2389 = vmatprep.mubr.msk.f32.mxu0 %vm121_vm0, %v63_v31  ;;  %p2734_p3 = por %p2733_p2, %p2732_p1 }
  0x31   :  { %p2735_p4 = pnand %p2734_p3, %p2728_p0 }
  0x32   :  { %2390 = vmatmul.mubr.msk.f32.gmra.mrb[18].mxu0 %vm121_vm0, %v64_v32 }
  0x33   :  { %2392 = vmatprep.mubr.msk.f32.mxu0 %vm121_vm0, %v65_v33 }
  0x36   :  { %2393 = vmatmul.mubr.msk.f32.gmra.mrb[20].mxu0 %vm121_vm0, %v66_v34 }
  0x37   :  { %2395 = vmatprep.mubr.msk.f32.mxu0 %vm121_vm0, %v67_v35 }
  0x3a   :  { %2396 = vmatmul.mubr.msk.f32.gmra.mrb[22].mxu0 %vm121_vm0, %v68_v36 }
  0x3b   :  { %2398 = vmatprep.mubr.msk.f32.mxu0 %vm121_vm0, %v69_v37 }
  0x3e   :  { %2399 = vmatmul.mubr.msk.f32.gmra.mrb[24].mxu0 %vm121_vm0, %v70_v38 }
  0x3f   :  { %2401 = vmatprep.mubr.msk.f32.mxu0 %vm121_vm0, %v71_v39 }
  0x42   :  { %2402 = vmatmul.mubr.msk.f32.gmra.mrb[26].mxu0 %vm121_vm0, %v72_v40 }
  0x43   :  { %2404 = vmatprep.mubr.msk.f32.mxu0 %vm121_vm0, %v73_v41 }
  0x46   :  { %2405 = vmatmul.mubr.msk.f32.gmra.mrb[28].mxu0 %vm121_vm0, %v74_v42 }
  0x47   :  { %2407 = vmatprep.mubr.msk.f32.mxu0 %vm121_vm0, %v75_v43 }
  0x4a   :  { %2408 = vmatmul.mubr.msk.f32.gmra.mrb[30].mxu0 %vm121_vm0, %v76_v44 }
  0x4b   :  { %2410 = vmatprep.mubr.msk.f32.mxu0 %vm121_vm0, %v77_v45 }
  0x4e   :  { %2411 = vmatmul.mubr.msk.f32.gmra.mrb[32].mxu0 %vm121_vm0, %v78_v46 }
  0x4f   :  { %2413 = vmatprep.mubr.msk.f32.mxu0 %vm121_vm0, %v79_v47 }
  0x52   :  { %2414 = vmatmul.mubr.msk.f32.gmra.mrb[34].mxu0 %vm121_vm0, %v80_v48 }
  0x53   :  { %2416 = vmatprep.mubr.msk.f32.mxu0 %vm121_vm0, %v81_v49 }
  0x56   :  { %2417 = vmatmul.mubr.msk.f32.gmra.mrb[36].mxu0 %vm121_vm0, %v82_v50 }
  0x57   :  { %2419 = vmatprep.mubr.msk.f32.mxu0 %vm121_vm0, %v83_v51 }
  0x5a   :  { %2420 = vmatmul.mubr.msk.f32.gmra.mrb[38].mxu0 %vm121_vm0, %v84_v52 }
  0x5b   :  { %2422 = vmatprep.mubr.msk.f32.mxu0 %vm121_vm0, %v85_v53 }
  0x5e   :  { %2423 = vmatmul.mubr.msk.f32.gmra.mrb[40].mxu0 %vm121_vm0, %v86_v54 }
  0x5f   :  { %2425 = vmatprep.mubr.msk.f32.mxu0 %vm121_vm0, %v87_v55  ;;  %v2751_v55 = vmov 0.0  }
  0x60   :  { %2458 = vmatprep.subr.mxu1 %v2751_v55  ;;  %2460 = vmatprep.mubr.msk.f32.mxu1 %vm2752_vm3, %v2751_v55 }
  0x62   :  { %2426 = vmatmul.mubr.msk.f32.gmra.mrb[42].mxu0 %vm121_vm0, %v88_v56  ;;  %v909_v56 = vld [vmem:[%s3533_s3] sm:$0xff] }
  0x63   :  { %2428 = vmatprep.mubr.msk.f32.mxu0 %vm121_vm0, %v89_v57  ;;  %v1018_v57 = vld [vmem:[%s3538_s8] sm:$0xff]  ;;  %2459 = vmatpush3.msra.mxu1 %v909_v56 }
  0x66   :  { %2429 = vmatmul.mubr.msk.f32.gmra.mrb[44].mxu0 %vm121_vm0, %v90_v58  ;;  %v1019_v58 = vld [vmem:[%s3538_s8 + $0x8] sm:$0xff] }
  0x67   :  { %2431 = vmatprep.mubr.msk.f32.mxu0 %vm121_vm0, %v91_v59 }
  0x6a   :  { %2432 = vmatmul.mubr.msk.f32.gmra.mrb[46].mxu0 %vm121_vm0, %v92_v60 }
  0x6b   :  { %2434 = vmatprep.mubr.msk.f32.mxu0 %vm121_vm0, %v93_v61 }
  0x6e   :  { %2435 = vmatmul.mubr.msk.f32.gmra.mrb[48].mxu0 %vm121_vm0, %v94_v62 }
  0x6f   :  { %2437 = vmatprep.mubr.msk.f32.mxu0 %vm121_vm0, %v95_v63 }
  0x72   :  { %2438 = vmatmul.mubr.msk.f32.gmra.mrb[50].mxu0 %vm121_vm0, %v96_v0 }
  0x73   :  { %2440 = vmatprep.mubr.msk.f32.mxu0 %vm121_vm0, %v97_v1 }
  0x76   :  { %2441 = vmatmul.mubr.msk.f32.gmra.mrb[52].mxu0 %vm121_vm0, %v98_v2 }
  0x77   :  { %2443 = vmatprep.mubr.msk.f32.mxu0 %vm121_vm0, %v99_v3 }
  0x7a   :  { %2444 = vmatmul.mubr.msk.f32.gmra.mrb[54].mxu0 %vm121_vm0, %v100_v4  ;;  %v3153_v4 = vpack.c.bf16 %v1019_v58, %v1018_v57 }
  0x7b   :  { %2446 = vmatprep.mubr.msk.f32.mxu0 %vm121_vm0, %v101_v5 }
  0x7c   :  { %2610 = vmatprep.subr.bf16.mxu1 %v3153_v4 }
  0x7e   :  { %2447 = vmatmul.mubr.msk.f32.gmra.mrb[56].mxu0 %vm121_vm0, %v102_v6 }
  0xe1   :  { %v2364_v8 = vpop.f32.mrb[0].mxu0  ;;  %v3117_v28 = vpop.f32.mrb[0].mxu1 }
  0xe2   :  { %v390_v9 = vadd.f32 %v2364_v8, %v3106_v7  ;;  %v384_v10 = vpop.f32.mrb[1].mxu0  ;;  %v3119_v30 = vpop.f32.mrb[1].mxu1 }
  0xe3   :  { %v385_v11 = vadd.f32 %v3106_v7, %v384_v10 }
  0xe4   :  { %v704_v12 = vmax.f32 %v390_v9, 0.0 }
  0xe5   :  { %v703_v13 = vmax.f32 %v385_v11, 0.0  ;;  %v2367_v14 = vpop.f32.mrb[2].mxu0 }
  0xe6   :  { %v769_v15 = vsel %vm767_vm2, %v704_v12, 0.0  ;;  %v400_v16 = vadd.f32 %v2367_v14, %v3106_v7  ;;  %v394_v17 = vpop.f32.mrb[3].mxu0 }
  0xe7   :  { %v768_v18 = vsel %vm767_vm2, %v703_v13, 0.0  ;;  %v395_v19 = vadd.f32 %v3106_v7, %v394_v17 }
  0xe8   :  { %v770_v20 = vadd.f32 %v769_v15, %v768_v18  ;;  %v706_v21 = vmax.f32 %v400_v16, 0.0 }
  0xe9   :  { %v705_v22 = vmax.f32 %v395_v19, 0.0  ;;  %v2370_v23 = vpop.f32.mrb[4].mxu0 }
  0xea   :  { %v410_v24 = vadd.f32 %v2370_v23, %v3106_v7  ;;  %v404_v25 = vpop.f32.mrb[5].mxu0  ;;  %v773_v31 = vsel %vm767_vm2, %v706_v21, 0.0 }
  0xeb   :  { %v771_v26 = vsel %vm767_vm2, %v705_v22, 0.0  ;;  %v405_v27 = vadd.f32 %v3106_v7, %v404_v25 }
  0xec   :  { %v772_v29 = vadd.f32 %v771_v26, %v770_v20  ;;  %v708_v32 = vmax.f32 %v410_v24, 0.0  ;;  %v3125_v40 = vpop.f32.mrb[2].mxu1 }
  0xed   :  { %v707_v33 = vmax.f32 %v405_v27, 0.0  ;;  %v2373_v34 = vpop.f32.mrb[6].mxu0  ;;  %v3127_v42 = vpop.f32.mrb[3].mxu1 }
  0xee   :  { %v774_v35 = vadd.f32 %v773_v31, %v772_v29  ;;  %v420_v36 = vadd.f32 %v2373_v34, %v3106_v7  ;;  %v414_v37 = vpop.f32.mrb[7].mxu0  ;;  %v777_v43 = vsel %vm767_vm2, %v708_v32, 0.0 }
  0xef   :  { %v775_v38 = vsel %vm767_vm2, %v707_v33, 0.0  ;;  %v415_v39 = vadd.f32 %v3106_v7, %v414_v37 }
  0xf0   :  { %v776_v41 = vadd.f32 %v775_v38, %v774_v35  ;;  %v710_v44 = vmax.f32 %v420_v36, 0.0  ;;  %v3133_v52 = vpop.f32.mrb[4].mxu1 }
  0xf1   :  { %v709_v45 = vmax.f32 %v415_v39, 0.0  ;;  %v2376_v46 = vpop.f32.mrb[8].mxu0  ;;  %v3135_v54 = vpop.f32.mrb[5].mxu1 }
  0xf2   :  { %v778_v47 = vadd.f32 %v777_v43, %v776_v41  ;;  %v430_v48 = vadd.f32 %v2376_v46, %v3106_v7  ;;  %v424_v49 = vpop.f32.mrb[9].mxu0  ;;  %v781_v59 = vsel %vm767_vm2, %v710_v44, 0.0 }
  0xf3   :  { %v779_v50 = vsel %vm767_vm2, %v709_v45, 0.0  ;;  %v425_v51 = vadd.f32 %v3106_v7, %v424_v49 }
  0xf4   :  { %v780_v53 = vadd.f32 %v779_v50, %v778_v47  ;;  %v712_v60 = vmax.f32 %v430_v48, 0.0 }
  0xf5   :  { %v711_v61 = vmax.f32 %v425_v51, 0.0  ;;  %v2379_v62 = vpop.f32.mrb[10].mxu0 }
  0xf6   :  { %v782_v63 = vadd.f32 %v781_v59, %v780_v53  ;;  %v440_v0 = vadd.f32 %v2379_v62, %v3106_v7  ;;  %v434_v1 = vpop.f32.mrb[11].mxu0  ;;  %v785_v6 = vsel %vm767_vm2, %v712_v60, 0.0 }
  0xf7   :  { %v783_v2 = vsel %vm767_vm2, %v711_v61, 0.0  ;;  %v435_v3 = vadd.f32 %v3106_v7, %v434_v1 }
  0xf8   :  { %v784_v5 = vadd.f32 %v783_v2, %v782_v63  ;;  %v714_v8 = vmax.f32 %v440_v0, 0.0  ;;  %v994_v63 = vld [vmem:[%s3535_s5] sm:$0xff] }
  0xf9   :  { %v713_v9 = vmax.f32 %v435_v3, 0.0  ;;  %v2382_v10 = vpop.f32.mrb[12].mxu0  ;;  %v3182_v0 = vld [vmem:[%s3536_s6] sm:$0x3]  ;;  %v2753_v3 = vmov 0  }
  0xfa   :  { %v786_v11 = vadd.f32 %v785_v6, %v784_v5  ;;  %v450_v12 = vadd.f32 %v2382_v10, %v3106_v7  ;;  %v444_v13 = vpop.f32.mrb[13].mxu0  ;;  %v789_v17 = vsel %vm767_vm2, %v714_v8, 0.0  ;;  %2702 = vset.pattern.permute.xlu0 %v2753_v3  ;;  %vm1496_vm4 = vcmp.gt.s32.totalorder %v3182_v0, 2  ;;  %2703 = vset.pattern.permute.xlu1 %v2753_v3 }
  0xfb   :  { %v787_v14 = vsel %vm767_vm2, %v713_v9, 0.0  ;;  %v445_v15 = vadd.f32 %v3106_v7, %v444_v13  ;;  %vm1671_vm5 = vcmp.gt.s32.totalorder %v3182_v0, 4  ;;  %999 = vperm.xlu0 %2702, %v994_v63   ;;  %v1497_v9 = vsel %vm1496_vm4, 1, %v2753_v3 }
  0xfc   :  { %v788_v16 = vadd.f32 %v787_v14, %v786_v11  ;;  %v716_v18 = vmax.f32 %v450_v12, 0.0  ;;  %v3191_v10 = vsel %vm1496_vm4, 1.0, %v2751_v55  ;;  %vm1757_vm6 = vcmp.gt.s32.totalorder %v3182_v0, 5 }
  0xfd   :  { %v715_v19 = vmax.f32 %v445_v15, 0.0  ;;  %v2385_v20 = vpop.f32.mrb[14].mxu0  ;;  %v995_v15 = vld [vmem:[%s3535_s5 + $0x8] sm:$0xff]  ;;  %vm1846_vm8 = vcmp.gt.s32.totalorder %v3182_v0, 6  ;;  %vm1321_vm9 = vcmp.gt.s32.totalorder %v3182_v0, 0  ;;  %vm1407_vm10 = vcmp.gt.s32.totalorder %v3182_v0, 1 }
  0xfe   :  { %v790_v21 = vadd.f32 %v789_v17, %v788_v16  ;;  %v460_v22 = vadd.f32 %v2385_v20, %v3106_v7  ;;  %v454_v23 = vpop.f32.mrb[15].mxu0  ;;  %v793_v27 = vsel %vm767_vm2, %v716_v18, 0.0  ;;  %v1672_v16 = vsel %vm1671_vm5, 1, %v2753_v3 }
  0xff   :  { %v791_v24 = vsel %vm767_vm2, %v715_v19, 0.0  ;;  %v455_v25 = vadd.f32 %v3106_v7, %v454_v23  ;;  %1002 = vperm.xlu0 %2702, %v995_v15   ;;  %vm1585_vm11 = vcmp.gt.s32.totalorder %v3182_v0, 3  ;;  %vm1935_vm12 = vcmp.gt.s32.totalorder %v3182_v0, 7  ;;  %v2179_v0 = vld [vmem:[%s3534_s4] ss:$0 sm:$0xff] }
 0x100   :  { %v792_v26 = vadd.f32 %v791_v24, %v790_v21  ;;  %v718_v29 = vmax.f32 %v460_v22, 0.0  ;;  %v2203_v21 = vsel %vm1671_vm5, 1.0, %v2751_v55  ;;  %v2205_v22 = vsel %vm1757_vm6, 1.0, %v2751_v55 }
 0x101   :  { %v717_v31 = vmax.f32 %v455_v25, 0.0  ;;  %v2388_v32 = vpop.f32.mrb[16].mxu0  ;;  %v1977_v25 = vrot.slane %v2205_v22, 6 }
 0x102   :  { %v794_v33 = vadd.f32 %v793_v27, %v792_v26  ;;  %v470_v34 = vadd.f32 %v2388_v32, %v3106_v7  ;;  %v464_v35 = vpop.f32.mrb[17].mxu0  ;;  %v797_v39 = vsel %vm767_vm2, %v718_v29, 0.0  ;;  %v1971_v32 = vrot.slane %v3191_v10, 4 }
 0x103   :  { %v795_v36 = vsel %vm767_vm2, %v717_v31, 0.0  ;;  %v465_v37 = vadd.f32 %v3106_v7, %v464_v35  ;;  %v1988_v35 = vsel %vm1959_vm7, %v2203_v21, %v1977_v25  ;;  %1499 = vperm.xlu0 %2702, %v1497_v9  }
 0x104   :  { %v796_v38 = vadd.f32 %v795_v36, %v794_v33  ;;  %v720_v41 = vmax.f32 %v470_v34, 0.0  ;;  %v2207_v36 = vsel %vm1846_vm8, 1.0, %v2751_v55 }
 0x105   :  { %v719_v43 = vmax.f32 %v465_v37, 0.0  ;;  %v2391_v44 = vpop.f32.mrb[18].mxu0 }
 0x106   :  { %v798_v45 = vadd.f32 %v797_v39, %v796_v38  ;;  %v480_v46 = vadd.f32 %v2391_v44, %v3106_v7  ;;  %v474_v47 = vpop.f32.mrb[19].mxu0  ;;  %v801_v51 = vsel %vm767_vm2, %v720_v41, 0.0  ;;  %v1980_v39 = vrot.slane %v2207_v36, 4 }
 0x107   :  { %v799_v48 = vsel %vm767_vm2, %v719_v43, 0.0  ;;  %v475_v49 = vadd.f32 %v3106_v7, %v474_v47  ;;  %v2195_v41 = vsel %vm1321_vm9, 1.0, %v2751_v55  ;;  %1674 = vperm.xlu0 %2702, %v1672_v16  }
 0x108   :  { %v800_v50 = vadd.f32 %v799_v48, %v798_v45  ;;  %v722_v53 = vmax.f32 %v480_v46, 0.0 }
 0x109   :  { %v721_v56 = vmax.f32 %v475_v49, 0.0  ;;  %v2394_v57 = vpop.f32.mrb[20].mxu0  ;;  %v2197_v49 = vsel %vm1407_vm10, 1.0, %v2751_v55 }
 0x10a   :  { %v802_v58 = vadd.f32 %v801_v51, %v800_v50  ;;  %v490_v59 = vadd.f32 %v2394_v57, %v3106_v7  ;;  %v484_v60 = vpop.f32.mrb[21].mxu0  ;;  %v805_v5 = vsel %vm767_vm2, %v722_v53, 0.0  ;;  %v2201_v53 = vsel %vm1585_vm11, 1.0, %v2751_v55 }
 0x10b   :  { %v803_v61 = vsel %vm767_vm2, %v721_v56, 0.0  ;;  %v485_v62 = vadd.f32 %v3106_v7, %v484_v60  ;;  %v2209_v56 = vsel %vm1935_vm12, 1.0, %v2751_v55 }
 0x10c   :  { %v804_v1 = vadd.f32 %v803_v61, %v802_v58  ;;  %v724_v2 = vmax.f32 %v490_v59, 0.0  ;;  %v1968_v59 = vrot.slane %v2197_v49, 6  ;;  %v1983_v63 = vrot.slane %v2209_v56, 2 }
 0x10d   :  { %v723_v6 = vmax.f32 %v485_v62, 0.0  ;;  %v2397_v8 = vpop.f32.mrb[22].mxu0  ;;  %v1974_v62 = vrot.slane %v2201_v53, 2 }
 0x10e   :  { %v809_v11 = vsel %vm767_vm2, %v724_v2, 0.0  ;;  %v806_v12 = vadd.f32 %v805_v5, %v804_v1  ;;  %v500_v13 = vadd.f32 %v2397_v8, %v3106_v7  ;;  %v494_v14 = vpop.f32.mrb[23].mxu0  ;;  %v1989_v1 = vsel %vm314_vm1, %v1988_v35, %v1980_v39 }
 0x10f   :  { %v807_v17 = vsel %vm767_vm2, %v723_v6, 0.0  ;;  %v495_v18 = vadd.f32 %v3106_v7, %v494_v14  ;;  %v1847_v8 = vsel %vm1846_vm8, 1, %v2753_v3  ;;  %v1985_v9 = vsel %vm1959_vm7, %v2195_v41, %v1968_v59 }
 0x110   :  { %v808_v19 = vadd.f32 %v807_v17, %v806_v12  ;;  %v726_v20 = vmax.f32 %v500_v13, 0.0  ;;  %v1986_v12 = vsel %vm314_vm1, %v1985_v9, %v1971_v32  ;;  %v1990_v13 = vsel %vm1962_vm13, %v1989_v1, %v1983_v63  ;;  %1849 = vperm.xlu0 %2702, %v1847_v8  }
 0x111   :  { %v725_v23 = vmax.f32 %v495_v18, 0.0  ;;  %v2400_v24 = vpop.f32.mrb[24].mxu0  ;;  %v1987_v15 = vsel %vm1962_vm13, %v1986_v12, %v1974_v62 }
 0x112   :  { %v813_v26 = vsel %vm767_vm2, %v726_v20, 0.0  ;;  %v810_v27 = vadd.f32 %v809_v11, %v808_v19  ;;  %v510_v29 = vadd.f32 %v2400_v24, %v3106_v7  ;;  %v504_v31 = vpop.f32.mrb[25].mxu0  ;;  %v2704_v20 = vpack.i.bf16 %v1990_v13, %v1987_v15 }
 0x113   :  { %v811_v33 = vsel %vm767_vm2, %v725_v23, 0.0  ;;  %v505_v34 = vadd.f32 %v3106_v7, %v504_v31 }
 0x114   :  { %v812_v37 = vadd.f32 %v811_v33, %v810_v27  ;;  %v728_v38 = vmax.f32 %v510_v29, 0.0  ;;  %2705 = vperm.xlu0 %2702, %v2704_v20  }
 0x115   :  { %v727_v43 = vmax.f32 %v505_v34, 0.0  ;;  %v2403_v44 = vpop.f32.mrb[26].mxu0 }
 0x116   :  { %v817_v45 = vsel %vm767_vm2, %v728_v38, 0.0  ;;  %v814_v46 = vadd.f32 %v813_v26, %v812_v37  ;;  %v520_v47 = vadd.f32 %v2403_v44, %v3106_v7  ;;  %v514_v48 = vpop.f32.mrb[27].mxu0 }
 0x117   :  { %v815_v50 = vsel %vm767_vm2, %v727_v43, 0.0  ;;  %v515_v51 = vadd.f32 %v3106_v7, %v514_v48 }
 0x118   :  { %v816_v57 = vadd.f32 %v815_v50, %v814_v46  ;;  %v730_v58 = vmax.f32 %v520_v47, 0.0 }
 0x119   :  { %v729_v60 = vmax.f32 %v515_v51, 0.0  ;;  %v2406_v61 = vpop.f32.mrb[28].mxu0 }
 0x11a   :  { %v818_v2 = vadd.f32 %v817_v45, %v816_v57  ;;  %v530_v5 = vadd.f32 %v2406_v61, %v3106_v7  ;;  %v524_v6 = vpop.f32.mrb[29].mxu0  ;;  %v821_v16 = vsel %vm767_vm2, %v730_v58, 0.0 }
 0x11b   :  { %v819_v10 = vsel %vm767_vm2, %v729_v60, 0.0  ;;  %v525_v11 = vadd.f32 %v3106_v7, %v524_v6 }
 0x11c   :  { %v820_v14 = vadd.f32 %v819_v10, %v818_v2  ;;  %v732_v17 = vmax.f32 %v530_v5, 0.0 }
 0x11d   :  { %v731_v18 = vmax.f32 %v525_v11, 0.0  ;;  %v2409_v19 = vpop.f32.mrb[30].mxu0 }
 0x11e   :  { %v822_v21 = vadd.f32 %v821_v16, %v820_v14  ;;  %v540_v22 = vadd.f32 %v2409_v19, %v3106_v7  ;;  %v534_v23 = vpop.f32.mrb[31].mxu0  ;;  %v825_v27 = vsel %vm767_vm2, %v732_v17, 0.0 }
 0x11f   :  { %v823_v24 = vsel %vm767_vm2, %v731_v18, 0.0  ;;  %v535_v25 = vadd.f32 %v3106_v7, %v534_v23 }
 0x120   :  { %v824_v26 = vadd.f32 %v823_v24, %v822_v21  ;;  %v734_v29 = vmax.f32 %v540_v22, 0.0 }
 0x121   :  { %v733_v31 = vmax.f32 %v535_v25, 0.0  ;;  %v2412_v32 = vpop.f32.mrb[32].mxu0 }
 0x122   :  { %v826_v33 = vadd.f32 %v825_v27, %v824_v26  ;;  %v550_v34 = vadd.f32 %v2412_v32, %v3106_v7  ;;  %v544_v35 = vpop.f32.mrb[33].mxu0  ;;  %v829_v41 = vsel %vm767_vm2, %v734_v29, 0.0 }
 0x123   :  { %v827_v36 = vsel %vm767_vm2, %v733_v31, 0.0  ;;  %v545_v37 = vadd.f32 %v3106_v7, %v544_v35 }
 0x124   :  { %v828_v38 = vadd.f32 %v827_v36, %v826_v33  ;;  %v736_v39 = vmax.f32 %v550_v34, 0.0 }
 0x125   :  { %v735_v43 = vmax.f32 %v545_v37, 0.0  ;;  %v2415_v44 = vpop.f32.mrb[34].mxu0 }
 0x126   :  { %v3260_v45 = vadd.f32 %v829_v41, %v828_v38  ;;  %v838_v46 = vsel %vm767_vm2, %v736_v39, 0.0  ;;  %v560_v47 = vadd.f32 %v2415_v44, %v3106_v7  ;;  %v554_v48 = vpop.f32.mrb[35].mxu0 }
 0x127   :  { %v837_v49 = vsel %vm767_vm2, %v735_v43, 0.0  ;;  %v555_v50 = vadd.f32 %v3106_v7, %v554_v48 }
 0x128   :  { %v839_v51 = vadd.f32 %v838_v46, %v837_v49  ;;  %v738_v53 = vmax.f32 %v560_v47, 0.0 }
 0x129   :  { %v737_v56 = vmax.f32 %v555_v50, 0.0  ;;  %v2418_v57 = vpop.f32.mrb[36].mxu0 }
 0x12a   :  { %v570_v58 = vadd.f32 %v2418_v57, %v3106_v7  ;;  %v564_v59 = vpop.f32.mrb[37].mxu0  ;;  %v842_v63 = vsel %vm767_vm2, %v738_v53, 0.0 }
 0x12b   :  { %v840_v60 = vsel %vm767_vm2, %v737_v56, 0.0  ;;  %v565_v61 = vadd.f32 %v3106_v7, %v564_v59 }
 0x12c   :  { %v841_v62 = vadd.f32 %v840_v60, %v839_v51  ;;  %v740_v1 = vmax.f32 %v570_v58, 0.0 }
 0x12d   :  { %v739_v2 = vmax.f32 %v565_v61, 0.0  ;;  %v2421_v5 = vpop.f32.mrb[38].mxu0 }
 0x12e   :  { %v843_v6 = vadd.f32 %v842_v63, %v841_v62  ;;  %v580_v8 = vadd.f32 %v2421_v5, %v3106_v7  ;;  %v574_v9 = vpop.f32.mrb[39].mxu0  ;;  %v846_v13 = vsel %vm767_vm2, %v740_v1, 0.0 }
 0x12f   :  { %v844_v10 = vsel %vm767_vm2, %v739_v2, 0.0  ;;  %v575_v11 = vadd.f32 %v3106_v7, %v574_v9 }
 0x130   :  { %v845_v12 = vadd.f32 %v844_v10, %v843_v6  ;;  %v742_v14 = vmax.f32 %v580_v8, 0.0 }
 0x131   :  { %v741_v15 = vmax.f32 %v575_v11, 0.0  ;;  %v2424_v16 = vpop.f32.mrb[40].mxu0 }
 0x132   :  { %v847_v17 = vadd.f32 %v846_v13, %v845_v12  ;;  %v590_v18 = vadd.f32 %v2424_v16, %v3106_v7  ;;  %v584_v19 = vpop.f32.mrb[41].mxu0  ;;  %v850_v23 = vsel %vm767_vm2, %v742_v14, 0.0 }
 0x133   :  { %v848_v20 = vsel %vm767_vm2, %v741_v15, 0.0  ;;  %v585_v21 = vadd.f32 %v3106_v7, %v584_v19 }
 0x134   :  { %v849_v22 = vadd.f32 %v848_v20, %v847_v17  ;;  %v744_v24 = vmax.f32 %v590_v18, 0.0 }
 0x135   :  { %v743_v25 = vmax.f32 %v585_v21, 0.0  ;;  %v2427_v26 = vpop.f32.mrb[42].mxu0 }
 0x136   :  { %v851_v27 = vadd.f32 %v850_v23, %v849_v22  ;;  %v600_v29 = vadd.f32 %v2427_v26, %v3106_v7  ;;  %v594_v31 = vpop.f32.mrb[43].mxu0  ;;  %v854_v35 = vsel %vm767_vm2, %v744_v24, 0.0 }
 0x137   :  { %v852_v32 = vsel %vm767_vm2, %v743_v25, 0.0  ;;  %v595_v33 = vadd.f32 %v3106_v7, %v594_v31 }
 0x138   :  { %v853_v34 = vadd.f32 %v852_v32, %v851_v27  ;;  %v746_v36 = vmax.f32 %v600_v29, 0.0 }
 0x139   :  { %v745_v37 = vmax.f32 %v595_v33, 0.0  ;;  %v2430_v38 = vpop.f32.mrb[44].mxu0 }
 0x13a   :  { %v855_v39 = vadd.f32 %v854_v35, %v853_v34  ;;  %v610_v41 = vadd.f32 %v2430_v38, %v3106_v7  ;;  %v604_v43 = vpop.f32.mrb[45].mxu0  ;;  %v858_v48 = vsel %vm767_vm2, %v746_v36, 0.0 }
 0x13b   :  { %v856_v44 = vsel %vm767_vm2, %v745_v37, 0.0  ;;  %v605_v46 = vadd.f32 %v3106_v7, %v604_v43 }
 0x13c   :  { %v857_v47 = vadd.f32 %v856_v44, %v855_v39  ;;  %v748_v49 = vmax.f32 %v610_v41, 0.0 }
 0x13d   :  { %v747_v50 = vmax.f32 %v605_v46, 0.0  ;;  %v2433_v51 = vpop.f32.mrb[46].mxu0  ;;  %v675_v46 = vadd.f32 %v3106_v7, %v3119_v30 }
 0x13e   :  { %v859_v53 = vadd.f32 %v858_v48, %v857_v47  ;;  %v620_v56 = vadd.f32 %v2433_v51, %v3106_v7  ;;  %v614_v57 = vpop.f32.mrb[47].mxu0  ;;  %v862_v61 = vsel %vm767_vm2, %v748_v49, 0.0 }
 0x13f   :  { %v860_v58 = vsel %vm767_vm2, %v747_v50, 0.0  ;;  %v615_v59 = vadd.f32 %v3106_v7, %v614_v57 }
 0x140   :  { %v861_v60 = vadd.f32 %v860_v58, %v859_v53  ;;  %v750_v62 = vmax.f32 %v620_v56, 0.0 }
 0x141   :  { %v749_v63 = vmax.f32 %v615_v59, 0.0  ;;  %v2436_v1 = vpop.f32.mrb[48].mxu0 }
 0x142   :  { %v863_v2 = vadd.f32 %v862_v61, %v861_v60  ;;  %v630_v5 = vadd.f32 %v2436_v1, %v3106_v7  ;;  %v624_v6 = vpop.f32.mrb[49].mxu0  ;;  %v866_v11 = vsel %vm767_vm2, %v750_v62, 0.0  ;;  %v680_v60 = vadd.f32 %v3117_v28, %v3106_v7 }
 0x143   :  { %v864_v8 = vsel %vm767_vm2, %v749_v63, 0.0  ;;  %v625_v9 = vadd.f32 %v3106_v7, %v624_v6  ;;  %v761_v61 = vmax.f32 %v675_v46, 0.0  ;;  %v685_v1 = vadd.f32 %v3106_v7, %v3127_v42 }
 0x144   :  { %v865_v10 = vadd.f32 %v864_v8, %v863_v2  ;;  %v752_v12 = vmax.f32 %v630_v5, 0.0  ;;  %v762_v8 = vmax.f32 %v680_v60, 0.0  ;;  %v1322_v60 = vsel %vm1321_vm9, 1, %v2753_v3 }
 0x145   :  { %v751_v13 = vmax.f32 %v625_v9, 0.0  ;;  %v2439_v14 = vpop.f32.mrb[50].mxu0  ;;  %v690_v9 = vadd.f32 %v3125_v40, %v3106_v7  ;;  %v888_v28 = vsel %vm767_vm2, %v761_v61, 0.0  ;;  %v700_v40 = vadd.f32 %v3133_v52, %v3106_v7  ;;  %1324 = vperm.xlu1 %2703, %v1322_v60  }
 0x146   :  { %v867_v15 = vadd.f32 %v866_v11, %v865_v10  ;;  %v640_v16 = vadd.f32 %v2439_v14, %v3106_v7  ;;  %v634_v17 = vpop.f32.mrb[51].mxu0  ;;  %v870_v21 = vsel %vm767_vm2, %v752_v12, 0.0  ;;  %v763_v11 = vmax.f32 %v685_v1, 0.0 }
 0x147   :  { %v868_v18 = vsel %vm767_vm2, %v751_v13, 0.0  ;;  %v635_v19 = vadd.f32 %v3106_v7, %v634_v17  ;;  %v695_v12 = vadd.f32 %v3106_v7, %v3135_v54  ;;  %v831_v14 = vrot.slane %v3260_v45, 4 }
 0x148   :  { %v869_v20 = vadd.f32 %v868_v18, %v867_v15  ;;  %v754_v22 = vmax.f32 %v640_v16, 0.0  ;;  %v890_v42 = vsel %vm767_vm2, %v762_v8, 0.0  ;;  %v764_v16 = vmax.f32 %v690_v9, 0.0 }
 0x149   :  { %v753_v23 = vmax.f32 %v635_v19, 0.0  ;;  %v2442_v24 = vpop.f32.mrb[52].mxu0  ;;  %v892_v17 = vsel %vm767_vm2, %v763_v11, 0.0  ;;  %v765_v18 = vmax.f32 %v695_v12, 0.0  ;;  %v766_v54 = vmax.f32 %v700_v40, 0.0 }
 0x14a   :  { %v871_v25 = vadd.f32 %v870_v21, %v869_v20  ;;  %v650_v26 = vadd.f32 %v2442_v24, %v3106_v7  ;;  %v644_v27 = vpop.f32.mrb[53].mxu0  ;;  %v874_v33 = vsel %vm767_vm2, %v754_v22, 0.0  ;;  %v832_v20 = vadd.f32 %v831_v14, %v3260_v45 }
 0x14b   :  { %v872_v29 = vsel %vm767_vm2, %v753_v23, 0.0  ;;  %v645_v31 = vadd.f32 %v3106_v7, %v644_v27  ;;  %v894_v22 = vsel %vm767_vm2, %v764_v16, 0.0  ;;  %v896_v23 = vsel %vm767_vm2, %v765_v18, 0.0  ;;  %v1242_v16 = vld [vmem:[%s3540_s10] sm:$0xff] }
 0x14c   :  { %v873_v32 = vadd.f32 %v872_v29, %v871_v25  ;;  %v756_v34 = vmax.f32 %v650_v26, 0.0  ;;  %v833_v25 = vrot.slane %v832_v20, 2  ;;  %v898_v27 = vsel %vm767_vm2, %v766_v54, 0.0 }
 0x14d   :  { %v755_v35 = vmax.f32 %v645_v31, 0.0  ;;  %v2445_v36 = vpop.f32.mrb[54].mxu0  ;;  %v1408_v61 = vsel %vm1407_vm10, 1, %v2753_v3 }
 0x14e   :  { %v875_v37 = vadd.f32 %v874_v33, %v873_v32  ;;  %v660_v38 = vadd.f32 %v2445_v36, %v3106_v7  ;;  %v654_v39 = vpop.f32.mrb[55].mxu0  ;;  %v878_v47 = vsel %vm767_vm2, %v756_v34, 0.0  ;;  %v834_v31 = vadd.f32 %v833_v25, %v832_v20  ;;  %1410 = vperm.xlu1 %2703, %v1408_v61   ;;  %v1244_v20 = vld [vmem:[%s3540_s10 + $0x10] sm:$0xff] }
 0x14f   :  { %v876_v41 = vsel %vm767_vm2, %v755_v35, 0.0  ;;  %v655_v43 = vadd.f32 %v3106_v7, %v654_v39 }
 0x150   :  { %v877_v44 = vadd.f32 %v876_v41, %v875_v37  ;;  %v758_v48 = vmax.f32 %v660_v38, 0.0  ;;  %v1020_v37 = vld [vmem:[%s3538_s8 + $0x10] sm:$0xff]  ;;  %v1021_v38 = vld [vmem:[%s3538_s8 + $0x18] sm:$0xff] }
 0x151   :  { %v757_v49 = vmax.f32 %v655_v43, 0.0  ;;  %v2448_v50 = vpop.f32.mrb[56].mxu0  ;;  %v2613_v43 = vpack.c.bf16 %v1021_v38, %v1020_v37 }
 0x152   :  { %v879_v51 = vadd.f32 %v878_v47, %v877_v44  ;;  %v670_v53 = vadd.f32 %v2448_v50, %v3106_v7  ;;  %v664_v56 = vpop.f32.mrb[57].mxu0  ;;  %v882_v30 = vsel %vm767_vm2, %v758_v48, 0.0  ;;  %v1010_v44 = vld [vmem:[%s3537_s7] sm:$0xff]  ;;  %v1011_v47 = vld [vmem:[%s3537_s7 + $0x8] sm:$0xff]  ;;  %v1012_v48 = vld [vmem:[%s3537_s7 + $0x10] sm:$0xff] }
 0x153   :  { %v880_v57 = vsel %vm767_vm2, %v757_v49, 0.0  ;;  %v665_v58 = vadd.f32 %v3106_v7, %v664_v56  ;;  %v835_v7 = vrot.slane %v834_v31, 1  ;;  %v1014_v49 = vld [vmem:[%s3537_s7 + $0x20] sm:$0xff]  ;;  %v1015_v50 = vld [vmem:[%s3537_s7 + $0x28] sm:$0xff]  ;;  %v996_v56 = vlaneseq }
 0x154   :  { %v881_v59 = vadd.f32 %v880_v57, %v879_v51  ;;  %v760_v62 = vmax.f32 %v670_v53, 0.0  ;;  %v1016_v51 = vld [vmem:[%s3537_s7 + $0x30] sm:$0xff]  ;;  %v1017_v53 = vld [vmem:[%s3537_s7 + $0x38] sm:$0xff] }
 0x155   :  { %v759_v63 = vmax.f32 %v665_v58, 0.0  ;;  %v836_v35 = vadd.f32 %v835_v7, %v834_v31  ;;  %v997_v57 = vand.u32 127, %v996_v56 }
 0x156   :  { %v883_v2 = vadd.f32 %v882_v30, %v881_v59  ;;  %v886_v10 = vsel %vm767_vm2, %v760_v62, 0.0  ;;  %v1586_v30 = vsel %vm1585_vm11, 1, %v2753_v3  ;;  %v1758_v62 = vsel %vm1757_vm6, 1, %v2753_v3 }
 0x157   :  { %v884_v5 = vsel %vm767_vm2, %v759_v63, 0.0  ;;  %v907_v39 = vmul.f32 0.00390625, %v836_v35  ;;  %1588 = vperm.xlu1 %2703, %v1586_v30   ;;  %v1936_v63 = vsel %vm1935_vm12, 1, %v2753_v3 }
 0x158   :  { %v885_v6 = vadd.f32 %v884_v5, %v883_v2 }
 0x15a   :  { %v887_v13 = vadd.f32 %v886_v10, %v885_v6 }
 0x15b   :  { %1760 = vperm.xlu1 %2703, %v1758_v62  }
 0x15c   :  { %v889_v15 = vadd.f32 %v888_v28, %v887_v13 }
 0x15e   :  { %v891_v19 = vadd.f32 %v890_v42, %v889_v15 }
 0x15f   :  { %1938 = vperm.xlu1 %2703, %v1936_v63  }
 0x160   :  { %v893_v21 = vadd.f32 %v892_v17, %v891_v19  ;;  %v1243_v17 = vld [vmem:[%s3540_s10 + $0x8] sm:$0xff]  ;;  %v2754_v19 = vmov 0.0|0.0  }
 0x161   :  { %v3398_v18 = vpack.c.bf16 %v1243_v17, %v1242_v16 }
 0x162   :  { %v895_v24 = vadd.f32 %v894_v22, %v893_v21  ;;  %v1245_v21 = vld [vmem:[%s3540_s10 + $0x18] sm:$0xff] }
 0x163   :  { %v3410_v54 = vpack.c.bf16 %v1245_v21, %v1244_v20 }
 0x164   :  { %v897_v26 = vadd.f32 %v896_v23, %v895_v24  ;;  %v2191_v24 = vld [vmem:[%s3539_s9] ss:$0 sm:$0xff] }
 0x166   :  { %v899_v29 = vadd.f32 %v898_v27, %v897_v26 }
 0x168   :  { %v900_v32 = vrot.slane %v899_v29, 4 }
 0x16a   :  { %v901_v33 = vadd.f32 %v900_v32, %v899_v29 }
 0x16c   :  { %v902_v52 = vrot.slane %v901_v33, 2 }
 0x16e   :  { %v903_v34 = vadd.f32 %v902_v52, %v901_v33 }
 0x170   :  { %v904_v45 = vrot.slane %v903_v34, 1 }
 0x172   :  { %v905_v36 = vadd.f32 %v904_v45, %v903_v34 }
 0x174   :  { %v908_v41 = vmul.f32 0.00390625, %v905_v36 }
 0x176   :  { %v920_v46 = vsel %vm919_vm14, %v908_v41, %v907_v39 }
 0x177   :  { %2461 = vmatmul.mubr.msk.f32.vlgmr.msra.gmra.mrb[6].mxu1 %vm767_vm2, %v920_v46  ;;  %vm1159_vm2 = vcmask 523264  }
 0x178   :  { %2612 = vmatpush3.bf16.msra.mxu1 %v3153_v4  ;;  %2471 = vmatprep.mubr.msk.f32.mxu1 %vm1022_vm15, %v1010_v44  ;;  %v1013_v4 = vld [vmem:[%s3537_s7 + $0x18] sm:$0xff] }
 0x179   :  { %2614 = vmatprep.subr.bf16.mxu1 %v2613_v43 }
 0x17a   :  { %v1000_v58 = vpop.permute.xlu0 %999 }
 0x17b   :  { %vm1004_vm0 = vcmp.eq.s32.totalorder %v997_v57, %v1000_v58 }
 0x17c   :  { %2616 = vmatpush3.bf16.msra.mxu1 %v2613_v43  ;;  %v2181_v59 = vsel %vm1004_vm0, 1.0, %v2751_v55 }
 0x17e   :  { %v1003_v40 = vpop.permute.xlu0 %1002 }
 0x17f   :  { %2472 = vmatmul.mubr.msk.f32.vlgmr.msra.gmra.mrb[8].mxu1 %vm1022_vm15, %v1011_v47  ;;  %vm1005_vm4 = vcmp.eq.s32.totalorder %v997_v57, %v1003_v40 }
 0x180   :  { %2474 = vmatprep.mubr.msk.f32.mxu1 %vm1022_vm15, %v1012_v48  ;;  %v2182_v22 = vsel %vm1005_vm4, 1.0, %v2751_v55 }
 0x183   :  { %2475 = vmatmul.mubr.msk.f32.gmra.mrb[10].mxu1 %vm1022_vm15, %v1013_v4 }
 0x184   :  { %2477 = vmatprep.mubr.msk.f32.mxu1 %vm1022_vm15, %v1014_v49  ;;  %v1500_v49 = vpop.permute.xlu0 %1499 }
 0x185   :  { %vm1501_vm8 = vcmp.eq.s32.totalorder %v1500_v49, 1 }
 0x187   :  { %2478 = vmatmul.mubr.msk.f32.gmra.mrb[12].mxu1 %vm1022_vm15, %v1015_v50 }
 0x188   :  { %2480 = vmatprep.mubr.msk.f32.mxu1 %vm1022_vm15, %v1016_v51 }
 0x18b   :  { %2481 = vmatmul.mubr.msk.f32.gmra.mrb[14].mxu1 %vm1022_vm15, %v1017_v53 }
 0x18c   :  { %2499 = vmatprep.mubr.msk.f32.mxu1 %vm1159_vm2, %v2181_v59 }
 0x1c4   :  { %v1325_v7 = vpop.permute.xlu1 %1324 }
 0x1c5   :  { %vm1326_vm5 = vcmp.eq.s32.totalorder %v1325_v7, 1 }
 0x1cd   :  { %v1411_v39 = vpop.permute.xlu1 %1410 }
 0x1ce   :  { %vm1412_vm6 = vcmp.eq.s32.totalorder %v1411_v39, 1 }
 0x1d6   :  { %v1589_v60 = vpop.permute.xlu1 %1588 }
 0x1d7   :  { %vm1590_vm9 = vcmp.eq.s32.totalorder %v1589_v60, 1 }
 0x24a   :  { %v989_v1 = vpop.f32.mrb[6].mxu1 }
 0x24b   :  { %v2462_v2 = vpop.f32.mrb[7].mxu1  ;;  %v990_v14 = vadd.f32 %v2179_v0, %v989_v1 }
 0x24c   :  { %v1675_v2 = vpop.permute.xlu0 %1674 }
 0x24d   :  { %2709 = vtanh.f32 %v990_v14  ;;  %vm1676_vm10 = vcmp.eq.s32.totalorder %v1675_v2, 1 }
 0x252   :  { %v2473_v5 = vpop.f32.mrb[8].mxu1 }
 0x253   :  { %v1113_v6 = vpop.f32.mrb[9].mxu1 }
 0x254   :  { %v2617_v8 = vpack.c.bf16 %v2473_v5, %v1113_v6 }
 0x256   :  { %v2476_v9 = vpop.f32.mrb[10].mxu1  ;;  %2618 = vmatprep.subr.bf16.mxu1 %v2617_v8 }
 0x257   :  { %v1123_v10 = vpop.f32.mrb[11].mxu1  ;;  %2620 = vmatpush3.bf16.msra.mxu1 %v2617_v8  ;;  %v2710_v23 = vpop.eup %2709 }
 0x258   :  { %v2621_v28 = vpack.c.bf16 %v2476_v9, %v1123_v10 }
 0x25a   :  { %v2479_v11 = vpop.f32.mrb[12].mxu1  ;;  %2622 = vmatprep.subr.bf16.mxu1 %v2621_v28 }
 0x25b   :  { %v1133_v12 = vpop.f32.mrb[13].mxu1  ;;  %2624 = vmatpush3.bf16.msra.mxu1 %v2621_v28 }
 0x25c   :  { %v2625_v3 = vpack.c.bf16 %v2479_v11, %v1133_v12  ;;  %v1761_v12 = vpop.permute.xlu1 %1760 }
 0x25d   :  { %vm1762_vm11 = vcmp.eq.s32.totalorder %v1761_v12, 1 }
 0x25e   :  { %v2482_v13 = vpop.f32.mrb[14].mxu1  ;;  %2626 = vmatprep.subr.bf16.mxu1 %v2625_v3 }
 0x25f   :  { %v1143_v42 = vpop.f32.mrb[15].mxu1  ;;  %2628 = vmatpush3.bf16.msra.mxu1 %v2625_v3 }
 0x260   :  { %v2629_v15 = vpack.c.bf16 %v2482_v13, %v1143_v42 }
 0x262   :  { %2630 = vmatprep.subr.bf16.mxu1 %v2629_v15 }
 0x263   :  { %2632 = vmatpush3.bf16.msra.mxu1 %v2629_v15 }
 0x264   :  { %2633 = vmatprep.subr.bf16.mxu1 %v2754_v19 }
 0x266   :  { %2500 = vmatmul.mubr.msk.f32.vlgmr.msra.gmra.mrb[16].mxu1 %vm1159_vm2, %v2182_v22 }
 0x267   :  { %2635 = vmatpush3.bf16.msra.mxu1 %v3398_v18  ;;  %2510 = vmatprep.mubr.msk.f32.mxu1 %vm2752_vm3, %v2751_v55 }
 0x268   :  { %2636 = vmatprep.subr.bf16.mxu1 %v2754_v19 }
 0x26b   :  { %2638 = vmatpush3.bf16.msra.mxu1 %v3410_v54 }
 0x26c   :  { %2639 = vmatprep.subr.bf16.mxu1 %v2754_v19 }
 0x26e   :  { %2511 = vmatmul.mubr.msk.f32.vlgmr.msra.gmra.mrb[18].mxu1 %vm1022_vm15, %v2710_v23 }
 0x26f   :  { %2641 = vmatpush3.bf16.msra.mxu1 %v3398_v18  ;;  %2521 = vmatprep.mubr.msk.f32.mxu1 %vm2752_vm3, %v2751_v55 }
 0x270   :  { %2642 = vmatprep.subr.bf16.mxu1 %v2754_v19 }
 0x273   :  { %2644 = vmatpush3.bf16.msra.mxu1 %v3410_v54 }
 0x274   :  { %2645 = vmatprep.subr.bf16.mxu1 %v2754_v19 }
 0x339   :  { %v2501_v25 = vpop.f32.mrb[16].mxu1 }
 0x33a   :  { %v3427_v26 = vadd.f32 %v2501_v25, %v2191_v24  ;;  %v1232_v27 = vpop.f32.mrb[17].mxu1 }
 0x33b   :  { %v1233_v29 = vadd.f32 %v2191_v24, %v1232_v27  ;;  %v1992_v24 = vld [vmem:[%s3541_s11 + $0x8] sm:$0xff]  ;;  %v1993_v27 = vld [vmem:[%s3541_s11 + $0x10] sm:$0xff] }
 0x341   :  { %v1315_v31 = vpop.f32.mrb[18].mxu1 }
 0x342   :  { %v1319_v32 = vadd.f32 %v1315_v31, %v1233_v29  ;;  %v2512_v33 = vpop.f32.mrb[19].mxu1 }
 0x344   :  { %2711 = vtanh.f32 %v1319_v32 }
 0x34e   :  { %v2712_v52 = vpop.eup %2711 }
 0x34f   :  { %v3429_v34 = vsel %vm1326_vm5, %v2712_v52, %v2710_v23  ;;  %v1991_v23 = vld [vmem:[%s3541_s11] sm:$0xff] }
 0x350   :  { %2522 = vmatmul.mubr.msk.f32.vlgmr.msra.gmra.mrb[20].mxu1 %vm1022_vm15, %v3429_v34  ;;  %v2681_v25 = vpack.c.bf16 %v1992_v24, %v1991_v23 }
 0x351   :  { %2647 = vmatpush3.bf16.msra.mxu1 %v3398_v18  ;;  %2532 = vmatprep.mubr.msk.f32.mxu1 %vm2752_vm3, %v2751_v55 }
 0x352   :  { %2648 = vmatprep.subr.bf16.mxu1 %v2754_v19 }
 0x355   :  { %2650 = vmatpush3.bf16.msra.mxu1 %v3410_v54 }
 0x356   :  { %2651 = vmatprep.subr.bf16.mxu1 %v2754_v19 }
 0x423   :  { %v1398_v35 = vpop.f32.mrb[20].mxu1 }
 0x424   :  { %v1403_v45 = vrot.slane %v1398_v35, 6  ;;  %v2523_v36 = vpop.f32.mrb[21].mxu1 }
 0x426   :  { %v1405_v37 = vadd.f32 %v1403_v45, %v1233_v29 }
 0x428   :  { %2713 = vtanh.f32 %v1405_v37 }
 0x432   :  { %v2714_v38 = vpop.eup %2713 }
 0x433   :  { %v1414_v41 = vrot.slane %v2714_v38, 2 }
 0x435   :  { %v3440_v43 = vsel %vm1412_vm6, %v1414_v41, %v3429_v34 }
 0x436   :  { %2533 = vmatmul.mubr.msk.f32.vlgmr.msra.gmra.mrb[22].mxu1 %vm1022_vm15, %v3440_v43  ;;  %v1946_v16 = vrot.slane %v3440_v43, 6 }
 0x437   :  { %2653 = vmatpush3.bf16.msra.mxu1 %v3398_v18  ;;  %2543 = vmatprep.mubr.msk.f32.mxu1 %vm2752_vm3, %v2751_v55 }
 0x438   :  { %2654 = vmatprep.subr.bf16.mxu1 %v2754_v19 }
 0x43b   :  { %2656 = vmatpush3.bf16.msra.mxu1 %v3410_v54 }
 0x43c   :  { %2657 = vmatprep.subr.bf16.mxu1 %v2754_v19 }
 0x509   :  { %v1487_v44 = vpop.f32.mrb[22].mxu1 }
 0x50a   :  { %v1492_v46 = vrot.slane %v1487_v44, 4  ;;  %v2534_v47 = vpop.f32.mrb[23].mxu1 }
 0x50c   :  { %v1494_v48 = vadd.f32 %v1492_v46, %v1233_v29 }
 0x50e   :  { %2715 = vtanh.f32 %v1494_v48 }
 0x518   :  { %v2716_v4 = vpop.eup %2715 }
 0x519   :  { %v1503_v50 = vrot.slane %v2716_v4, 4 }
 0x51b   :  { %v3451_v51 = vsel %vm1501_vm8, %v1503_v50, %v3440_v43 }
 0x51c   :  { %2544 = vmatmul.mubr.msk.f32.vlgmr.msra.gmra.mrb[24].mxu1 %vm1022_vm15, %v3451_v51  ;;  %v1948_v17 = vrot.slane %v3451_v51, 4 }
 0x51d   :  { %2659 = vmatpush3.bf16.msra.mxu1 %v3398_v18  ;;  %2554 = vmatprep.mubr.msk.f32.mxu1 %vm2752_vm3, %v2751_v55 }
 0x51e   :  { %2660 = vmatprep.subr.bf16.mxu1 %v2754_v19 }
 0x521   :  { %2662 = vmatpush3.bf16.msra.mxu1 %v3410_v54 }
 0x522   :  { %2663 = vmatprep.subr.bf16.mxu1 %v2754_v19 }
 0x5ef   :  { %v1576_v53 = vpop.f32.mrb[24].mxu1 }
 0x5f0   :  { %v1581_v56 = vrot.slane %v1576_v53, 2  ;;  %v2545_v57 = vpop.f32.mrb[25].mxu1 }
 0x5f2   :  { %v1583_v58 = vadd.f32 %v1581_v56, %v1233_v29  ;;  %v1994_v29 = vld [vmem:[%s3541_s11 + $0x18] sm:$0xff] }
 0x5f3   :  { %v2685_v31 = vpack.c.bf16 %v1994_v29, %v1993_v27 }
 0x5f4   :  { %2717 = vtanh.f32 %v1583_v58 }
 0x5fe   :  { %v2718_v59 = vpop.eup %2717 }
 0x5ff   :  { %v1592_v61 = vrot.slane %v2718_v59, 6 }
 0x601   :  { %v1594_v30 = vsel %vm1590_vm9, %v1592_v61, %v3451_v51 }
 0x602   :  { %2555 = vmatmul.mubr.msk.f32.vlgmr.msra.gmra.mrb[26].mxu1 %vm1022_vm15, %v1594_v30  ;;  %v1950_v20 = vrot.slane %v1594_v30, 2 }
 0x603   :  { %2665 = vmatpush3.bf16.msra.mxu1 %v3398_v18  ;;  %2565 = vmatprep.mubr.msk.f32.mxu1 %vm2752_vm3, %v2751_v55 }
 0x604   :  { %2666 = vmatprep.subr.bf16.mxu1 %v2754_v19 }
 0x607   :  { %2668 = vmatpush3.bf16.msra.mxu1 %v3410_v54 }
 0x608   :  { %2669 = vmatprep.subr.bf16.mxu1 %v2754_v19 }
 0x6d5   :  { %v1665_v62 = vpop.f32.mrb[26].mxu1 }
 0x6d6   :  { %v1669_v63 = vadd.f32 %v1665_v62, %v3427_v26  ;;  %v2556_v1 = vpop.f32.mrb[27].mxu1 }
 0x6d8   :  { %2719 = vtanh.f32 %v1669_v63 }
 0x6e2   :  { %v2720_v5 = vpop.eup %2719 }
 0x6e3   :  { %v3470_v6 = vsel %vm1676_vm10, %v2720_v5, %v1594_v30 }
 0x6e4   :  { %2566 = vmatmul.mubr.msk.f32.vlgmr.msra.gmra.mrb[28].mxu1 %vm1022_vm15, %v3470_v6 }
 0x6e5   :  { %2671 = vmatpush3.bf16.msra.mxu1 %v3398_v18  ;;  %2576 = vmatprep.mubr.msk.f32.mxu1 %vm2752_vm3, %v2751_v55 }
 0x6e6   :  { %2672 = vmatprep.subr.bf16.mxu1 %v2754_v19 }
 0x6e9   :  { %2674 = vmatpush3.bf16.msra.mxu1 %v3410_v54 }
 0x6ea   :  { %2675 = vmatprep.subr.bf16.mxu1 %v2754_v19 }
 0x7b7   :  { %v1748_v8 = vpop.f32.mrb[28].mxu1 }
 0x7b8   :  { %v1753_v9 = vrot.slane %v1748_v8, 6  ;;  %v2567_v10 = vpop.f32.mrb[29].mxu1 }
 0x7ba   :  { %v1755_v28 = vadd.f32 %v1753_v9, %v3427_v26 }
 0x7bc   :  { %2721 = vtanh.f32 %v1755_v28 }
 0x7c6   :  { %v2722_v11 = vpop.eup %2721 }
 0x7c7   :  { %v1764_v0 = vrot.slane %v2722_v11, 2 }
 0x7c9   :  { %v1766_v3 = vsel %vm1762_vm11, %v1764_v0, %v3470_v6 }
 0x7ca   :  { %2577 = vmatmul.mubr.msk.f32.vlgmr.msra.gmra.mrb[30].mxu1 %vm1022_vm15, %v1766_v3  ;;  %v1952_v45 = vrot.slane %v1766_v3, 6 }
 0x7cb   :  { %2677 = vmatpush3.bf16.msra.mxu1 %v3398_v18  ;;  %2587 = vmatprep.mubr.msk.f32.mxu1 %vm2752_vm3, %v2751_v55  ;;  %v1850_v18 = vpop.permute.xlu0 %1849  ;;  %v1960_v55 = vsel %vm1959_vm7, %v3429_v34, %v1946_v16  ;;  %v1939_v34 = vpop.permute.xlu1 %1938 }
 0x7cc   :  { %2678 = vmatprep.subr.bf16.mxu1 %v2754_v19  ;;  %vm1851_vm12 = vcmp.eq.s32.totalorder %v1850_v18, 1  ;;  %v1961_v22 = vsel %vm314_vm1, %v1960_v55, %v1948_v17  ;;  %vm1940_vm3 = vcmp.eq.s32.totalorder %v1939_v34, 1  ;;  %v1964_v41 = vsel %vm1959_vm7, %v3470_v6, %v1952_v45 }
 0x7cf   :  { %2680 = vmatpush3.bf16.msra.mxu1 %v3410_v54  ;;  %v1963_v54 = vsel %vm1962_vm13, %v1961_v22, %v1950_v20  ;;  %v2706_v46 = vpop.permute.xlu0 %2705 }
 0x7d0   :  { %2682 = vmatprep.subr.bf16.mxu1 %v2681_v25  ;;  %v2708_v48 = vunpack.i.h.bf16 %v2706_v46  ;;  %v2707_v50 = vunpack.i.l.bf16 %v2706_v46 }
 0x89d   :  { %v1837_v13 = vpop.f32.mrb[30].mxu1 }
 0x89e   :  { %v1842_v14 = vrot.slane %v1837_v13, 4  ;;  %v2578_v42 = vpop.f32.mrb[31].mxu1 }
 0x8a0   :  { %v1844_v15 = vadd.f32 %v1842_v14, %v3427_v26 }
 0x8a2   :  { %2723 = vtanh.f32 %v1844_v15 }
 0x8ac   :  { %v2724_v40 = vpop.eup %2723 }
 0x8ad   :  { %v1853_v21 = vrot.slane %v2724_v40, 4 }
 0x8af   :  { %v1855_v19 = vsel %vm1851_vm12, %v1853_v21, %v1766_v3 }
 0x8b0   :  { %2588 = vmatmul.mubr.msk.f32.vlgmr.msra.gmra.mrb[32].mxu1 %vm1022_vm15, %v1855_v19  ;;  %v1954_v36 = vrot.slane %v1855_v19, 4 }
 0x8b1   :  { %2598 = vmatprep.mubr.msk.f32.mxu1 %vm1022_vm15, %v1963_v54  ;;  %2684 = vmatpush3.bf16.msra.mxu1 %v2681_v25 }
 0x8b2   :  { %2686 = vmatprep.subr.bf16.mxu1 %v2685_v31  ;;  %v1965_v43 = vsel %vm314_vm1, %v1964_v41, %v1954_v36 }
 0x8b5   :  { %2688 = vmatpush3.bf16.msra.mxu1 %v2685_v31 }
 0x983   :  { %v1926_v32 = vpop.f32.mrb[32].mxu1 }
 0x984   :  { %v1931_v33 = vrot.slane %v1926_v32, 2  ;;  %v2589_v7 = vpop.f32.mrb[33].mxu1 }
 0x986   :  { %v1933_v52 = vadd.f32 %v1931_v33, %v3427_v26  ;;  %v2210_v26 = vld [vmem:[%s3542_s12] ss:$0 sm:$0xff] }
 0x988   :  { %2725 = vtanh.f32 %v1933_v52 }
 0x992   :  { %v2726_v35 = vpop.eup %2725 }
 0x993   :  { %v1942_v37 = vrot.slane %v2726_v35, 6 }
 0x995   :  { %v1944_v38 = vsel %vm1940_vm3, %v1942_v37, %v1855_v19 }
 0x996   :  { %v1957_v39 = vrot.slane %v1944_v38, 2 }
 0x998   :  { %v1966_v44 = vsel %vm1962_vm13, %v1965_v43, %v1957_v39 }
 0x999   :  { %2599 = vmatmul.mubr.msk.f32.vlgmr.msra.gmra.mrb[34].mxu1 %vm1022_vm15, %v1966_v44 }
 0xa6c   :  { %v2600_v47 = vpop.f32.mrb[34].mxu1 }
 0xa6d   :  { %v2080_v4 = vadd.f32 %v2600_v47, %v2210_v26  ;;  %v2074_v49 = vpop.f32.mrb[35].mxu1 }
 0xa6e   :  { %v2075_v51 = vadd.f32 %v2210_v26, %v2074_v49 }
 0xa6f   :  { %v2094_v53 = vmul.f32 %v2708_v48, %v2080_v4 }
 0xa70   :  { %v2093_v56 = vmul.f32 %v2707_v50, %v2075_v51 }
 0xa71   :  { %2096 = vst [vmem:[#allocation2 + $0x8] sm:$0xff] %v2094_v53 }
 0xa72   :  { %2095 = vst [vmem:[#allocation2] sm:$0xff] %v2093_v56 }
 0xa73   :  { %2738 = shalt.err (!%p2735_p4)
}
 0xa74   :  { %s2739_s24 = scalar_lea.hbm %s3543_s13, 256 }
 0xa75   :  { %p2740_p5 = scmp.ne.s32.totalorder %s3543_s13, %s2739_s24  ;;  %p2743_p6 = scmp.lt.u32.totalorder %s2739_s24, %s3543_s13 }
 0xa77   :  { %p2745_p7 = pnand %p2743_p6, %p2740_p5 }
 0xa79   :  { %2748 = shalt.err (!%p2745_p7)
}
 0xa7a   :  { %s2756_s27 = smov 128   ;;  %s2757_s6 = smov 8  }
 0xa7b   :  { %2108 = dma.vmem_to_hbm [thread:$0]  %s2103_s22, 256, %s3543_s13, [#allocation3], %s2756_s27, %s2756_s27, %s2757_s6  }
 0xa7c   :  { %2749 = dma.done.wait [#allocation3], 256  }
 0xa7d   :  { %2750 = vsyncadd [#allocation3], 4294967040 }
 0xa7e   :  { %2112 = vsyncpa [#allocation3], 1 }

</bundles_post_ra>
